<compile_context>
chip_gen: v7x
topology: tpu7x:2x2x1
jax: 0.10.0
libtpu: 0.0.40
codegen_flags: <defaults>
</compile_context>

<pallas_src>
import functools

import jax
import jax.numpy as jnp
from jax.experimental import pallas as pl
from jax.experimental.pallas import tpu as pltpu


# ----------------------------------------------------------------------------
# Fused kernel: stem matmul + BN + swish -> pointwise matmul + BN + swish
#               -> partial global-average-pool -> head matmul epilogue.
# ----------------------------------------------------------------------------
def _fused_backbone_head_kernel(p_ref, sw_ref, ss_ref, sb_ref,
                                pw_ref, ps_ref, pb_ref,
                                hw_ref, hb_ref,
                                o_ref, acc_ref, *, ts, s_valid, needs_mask):
    c = pl.program_id(1)          # reduction core-split index
    t = pl.program_id(2)          # spatial tile index within this split
    T = pl.num_programs(2)

    @pl.when(t == 0)
    def _():
        acc_ref[...] = jnp.zeros_like(acc_ref)

    # Stem conv as matmul: (ts, K) @ (K, C0p) -> (ts, C0p), folded BN + swish.
    p = p_ref[0]                                                   # (ts, K) bf16
    h0 = jnp.dot(p, sw_ref[...], preferred_element_type=jnp.float32)
    h0 = h0 * ss_ref[...] + sb_ref[...]
    # Swish materialized exactly once, directly as bf16 (v5e single vst slot).
    h0 = (h0 * jax.nn.sigmoid(h0)).astype(pw_ref.dtype)

    # Pointwise (1x1x1) conv + folded BN + swish, per spatial location.
    h1 = jnp.dot(h0, pw_ref[...], preferred_element_type=jnp.float32)
    h1 = h1 * ps_ref[...] + pb_ref[...]
    h1 = h1 * jax.nn.sigmoid(h1)

    F = h1.shape[-1]

    def _accumulate(vals):
        # (ts, F) -> (ts//8, 8, F) sum over axis 0: pure vreg-wise VPU adds;
        # the single cross-sublane reduce happens once in the epilogue.
        acc_ref[...] += vals.reshape(ts // 8, 8, F).sum(axis=0)

    if needs_mask:                                  # static Python check
        g = c * T + t                               # global spatial tile index
        has_pad = (g + 1) * ts > s_valid            # tile contains padded rows?

        @pl.when(has_pad)
        def _():
            row = g * ts + jax.lax.broadcasted_iota(jnp.int32, (ts, 1), 0)
            _accumulate(jnp.where(row < s_valid, h1, 0.0))

        @pl.when(jnp.logical_not(has_pad))
        def _():
            _accumulate(h1)
    else:
        _accumulate(h1)

    # Epilogue: finish this split's pool and emit its partial logits.
    @pl.when(t == T - 1)
    def _():
        feats = jnp.sum(acc_ref[...], axis=0, keepdims=True)      # (1, F)
        # head_w is pre-scaled by 1/S (pool fold), head_b by 1/core_split, so
        # the per-split partial logits sum to the exact result.
        logits = jnp.dot(feats.astype(hw_ref.dtype), hw_ref[...],
                         preferred_element_type=jnp.float32) + hb_ref[...]
        o_ref[0, 0] = logits.astype(o_ref.dtype)


def fused_forward(patches, stem_w, stem_scale, stem_bias,
                  pw_w, pw_scale, pw_bias, head_w, head_b,
                  *, s_valid, ts, cs):
    """patches: (N, Sp, K) bf16 with Sp == cs * T * ts.  Returns (N, Op) f32."""
    N, Sp, K = patches.shape
    C0p = stem_w.shape[1]
    F = pw_w.shape[1]
    Op = head_w.shape[1]
    T = Sp // (cs * ts)
    needs_mask = Sp > s_valid

    # Explicit VMEM budget (v7x: 64 MiB physical / 32 MiB default scoped):
    # double-buffered patches tile + (ts, F) f32/bf16 intermediates + weights.
    vmem_est = (2 * ts * K * 2 + 4 * ts * F * 4 + ts * F * 2
                + 8 * (K * C0p + C0p * F + F * Op) + (2 << 20))
    vmem_limit = int(min(max(vmem_est, 32 << 20), 48 << 20))

    out = pl.pallas_call(
        functools.partial(_fused_backbone_head_kernel,
                          ts=ts, s_valid=s_valid, needs_mask=needs_mask),
        out_shape=jax.ShapeDtypeStruct((N, cs, 1, Op), jnp.float32),
        grid_spec=pltpu.PrefetchScalarGridSpec(
            num_scalar_prefetch=0,
            grid=(N, cs, T),
            in_specs=[
                pl.BlockSpec((1, ts, K), lambda n, c, t: (n, c * T + t, 0)),
                pl.BlockSpec((K, C0p), lambda n, c, t: (0, 0)),     # stem_w
                pl.BlockSpec((1, C0p), lambda n, c, t: (0, 0)),     # stem_scale
                pl.BlockSpec((1, C0p), lambda n, c, t: (0, 0)),     # stem_bias
                pl.BlockSpec((C0p, F), lambda n, c, t: (0, 0)),     # pw_w
                pl.BlockSpec((1, F), lambda n, c, t: (0, 0)),       # pw_scale
                pl.BlockSpec((1, F), lambda n, c, t: (0, 0)),       # pw_bias
                pl.BlockSpec((F, Op), lambda n, c, t: (0, 0)),      # head_w
                pl.BlockSpec((1, Op), lambda n, c, t: (0, 0)),      # head_b
            ],
            out_specs=pl.BlockSpec((1, 1, 1, Op), lambda n, c, t: (n, c, 0, 0)),
            scratch_shapes=[pltpu.VMEM((8, F), jnp.float32)],
        ),
        compiler_params=pltpu.CompilerParams(
            dimension_semantics=("parallel", "parallel", "arbitrary"),
            vmem_limit_bytes=vmem_limit),
    )(patches, stem_w, stem_scale, stem_bias, pw_w, pw_scale, pw_bias,
      head_w, head_b)

    # Combine the per-split partial logits (tiny (N, cs, Op) sum in XLA).
    return out[:, :, 0, :].sum(axis=1)


# ----------------------------------------------------------------------------
# Full forward pass (glue in plain JAX: transpose, pad, im2col, slicing).
# ----------------------------------------------------------------------------
def model_forward(x, params, *, ts=4096, core_split=2):
    # x: [N, Cin, D, H, W]  (PyTorch NCDHW)
    N, Cin, D, H, W = x.shape
    x_cl = jnp.transpose(x, (0, 2, 3, 4, 1)).astype(jnp.bfloat16)
    x_pad = jnp.pad(x_cl, ((0, 0), (1, 1), (1, 1), (1, 1), (0, 0)))
    Do, Ho, Wo = D // 2, H // 2, W // 2                       # stride-2 stem

    # im2col for the 3x3x3 stride-2 stem conv (cheap at this test size).
    # TODO(synk): fuse this gather into the kernel (halo DMA + 27 in-kernel
    # tap accumulations) to avoid the 27x HBM amplification at ~96^3 volumes.
    cols = []
    for kd in range(3):
        for kh in range(3):
            for kw in range(3):
                cols.append(
                    x_pad[:, kd:kd + 2 * Do:2, kh:kh + 2 * Ho:2,
                          kw:kw + 2 * Wo:2, :])
    patches = jnp.stack(cols, axis=-2)                        # (N,Do,Ho,Wo,27,Cin)
    S = Do * Ho * Wo
    patches = patches.reshape(N, S, 27 * Cin)

    K = params["stem_w"].shape[0]
    # Big spatial tile (fewer grid steps), clamped to S, multiple of 16.
    ts = min(ts, -(-S // 16) * 16)
    total_tiles = -(-S // ts)
    # Core-split of the spatial reduction (feeds both v7x TCs at batch 1);
    # skip it when the batch axis alone already parallelizes and splitting
    # would only add a pure-padding tile.
    if N == 1:
        cs = core_split
    else:
        cs = core_split if total_tiles % core_split == 0 else 1
    total_tiles = -(-total_tiles // cs) * cs
    Sp = total_tiles * ts
    patches = jnp.pad(patches, ((0, 0), (0, Sp - S), (0, K - 27 * Cin)))

    # Fold 1/S (global average pool) into the head weight and 1/cs into the
    # head bias on the host; weights are already bf16 except the tiny head.
    head_w = (params["head_w"] * (1.0 / S)).astype(jnp.bfloat16)
    head_b = params["head_b"] * (1.0 / cs)

    logits = fused_forward(
        patches, params["stem_w"], params["stem_scale"], params["stem_bias"],
        params["pw_w"], params["pw_scale"], params["pw_bias"],
        head_w, head_b, s_valid=S, ts=ts, cs=cs)

    bowel = logits[:, 0:1]
    extravasation = logits[:, 1:2]
    kidney = logits[:, 2:5]
    liver = logits[:, 5:8]
    spleen = logits[:, 8:11]
    return bowel, extravasation, kidney, liver, spleen


# ----------------------------------------------------------------------------
# Deterministic synthetic parameter initialization.
# Effective widths: stem C0=32, feature dim F=128, 11 head logits.  C0 and the
# head output are zero-padded to 128 lanes (lane-dense matmuls / stores); K is
# padded only 27->32 (NOT 128) to keep the dominant patches stream small.
# ----------------------------------------------------------------------------
def init_params(key, *, cin=1, c0=32, feat=128, n_out=11,
                kpad=32, c0_pad=128, out_pad=128):
    ks = jax.random.split(key, 8)
    f32 = jnp.float32

    stem_w = jnp.zeros((kpad, c0_pad), f32)
    stem_w = stem_w.at[:27 * cin, :c0].set(
        0.1 * jax.random.normal(ks[0], (27 * cin, c0), f32))
    stem_scale = jnp.ones((1, c0_pad), f32)
    stem_scale = stem_scale.at[:, :c0].set(
        1.0 + 0.05 * jax.random.normal(ks[1], (1, c0), f32))
    stem_bias = jnp.zeros((1, c0_pad), f32)
    stem_bias = stem_bias.at[:, :c0].set(
        0.05 * jax.random.normal(ks[2], (1, c0), f32))

    pw_w = jnp.zeros((c0_pad, feat), f32)
    pw_w = pw_w.at[:c0, :].set(
        0.1 * jax.random.normal(ks[3], (c0, feat), f32))
    pw_scale = 1.0 + 0.05 * jax.random.normal(ks[4], (1, feat), f32)
    pw_bias = 0.05 * jax.random.normal(ks[5], (1, feat), f32)

    head_w = jnp.zeros((feat, out_pad), f32)
    head_w = head_w.at[:, :n_out].set(
        0.1 * jax.random.normal(ks[6], (feat, n_out), f32))
    head_b = jnp.zeros((1, out_pad), f32)
    head_b = head_b.at[:, :n_out].set(
        0.05 * jax.random.normal(ks[7], (1, n_out), f32))

    return {
        # Matmul weights pre-cast to bf16 once here (no per-call casts).
        "stem_w": stem_w.astype(jnp.bfloat16),   # 3x3x3 conv as (K, C0p)
        "stem_scale": stem_scale,                # folded BN
        "stem_bias": stem_bias,
        "pw_w": pw_w.astype(jnp.bfloat16),       # 1x1x1 conv
        "pw_scale": pw_scale,
        "pw_bias": pw_bias,
        "head_w": head_w,                        # fused 5-head linear (f32; 1/S folded per call)
        "head_b": head_b,
    }


if __name__ == "__main__":
    key = jax.random.PRNGKey(0)
    k_x, k_p = jax.random.split(key)

    params = init_params(k_p)

    # Small 3-D volume: batch=2, in_channels=1, D=H=W=16  (NCDHW).
    x = jax.random.normal(k_x, (2, 1, 16, 16, 16), jnp.float32)
    outs = jax.block_until_ready(jax.jit(model_forward)(x, params))

    bowel, extravasation, kidney, liver, spleen = outs
    assert bowel.shape == (2, 1)
    assert extravasation.shape == (2, 1)
    assert kidney.shape == (2, 3)
    assert liver.shape == (2, 3)
    assert spleen.shape == (2, 3)
    assert all(bool(jnp.all(jnp.isfinite(o))) for o in outs)

    # Batch-1 run exercises the 2-way core split of the spatial reduction
    # (the v7x two-TensorCore path), including the fully-masked padding tile.
    x1 = jax.random.normal(k_x, (1, 1, 16, 16, 16), jnp.float32)
    outs1 = jax.block_until_ready(jax.jit(model_forward)(x1, params))
    assert outs1[0].shape == (1, 1)
    assert outs1[2].shape == (1, 3)
    assert all(bool(jnp.all(jnp.isfinite(o))) for o in outs1)

    print("KERNEL_OK")
</pallas_src>

<mosaic_0001>
module attributes {stable_mosaic.version = 11 : i64} {
  func.func @_fused_backbone_head_kernel(%arg0: i32, %arg1: i32, %arg2: i32, %arg3: memref<1x512x32xbf16, #tpu.memory_space<vmem>>, %arg4: memref<32x128xbf16, #tpu.memory_space<vmem>>, %arg5: memref<1x128xf32, #tpu.memory_space<vmem>>, %arg6: memref<1x128xf32, #tpu.memory_space<vmem>>, %arg7: memref<128x128xbf16, #tpu.memory_space<vmem>>, %arg8: memref<1x128xf32, #tpu.memory_space<vmem>>, %arg9: memref<1x128xf32, #tpu.memory_space<vmem>>, %arg10: memref<128x128xbf16, #tpu.memory_space<vmem>>, %arg11: memref<1x128xf32, #tpu.memory_space<vmem>>, %arg12: memref<1x1x1x128xf32, #tpu.memory_space<vmem>>, %arg13: memref<8x128xf32, #tpu.memory_space<vmem>>) attributes {dimension_semantics = [#tpu.dimension_semantics<parallel>, #tpu.dimension_semantics<parallel>, #tpu.dimension_semantics<arbitrary>], iteration_bounds = array<i64: 2, 1, 1>, scalar_prefetch = 0 : i64, scratch_operands = 1 : i64, tpu.core_type = #tpu.core_type<tc>, window_params = [{transform_indices = @transform_0, window_bounds = array<i64: 1, 512, 32>}, {pipeline_mode = #tpu.pipeline_mode<synchronous>, transform_indices = @transform_1, window_bounds = array<i64: 32, 128>}, {pipeline_mode = #tpu.pipeline_mode<synchronous>, transform_indices = @transform_2, window_bounds = array<i64: 1, 128>}, {pipeline_mode = #tpu.pipeline_mode<synchronous>, transform_indices = @transform_3, window_bounds = array<i64: 1, 128>}, {pipeline_mode = #tpu.pipeline_mode<synchronous>, transform_indices = @transform_4, window_bounds = array<i64: 128, 128>}, {pipeline_mode = #tpu.pipeline_mode<synchronous>, transform_indices = @transform_5, window_bounds = array<i64: 1, 128>}, {pipeline_mode = #tpu.pipeline_mode<synchronous>, transform_indices = @transform_6, window_bounds = array<i64: 1, 128>}, {pipeline_mode = #tpu.pipeline_mode<synchronous>, transform_indices = @transform_7, window_bounds = array<i64: 128, 128>}, {pipeline_mode = #tpu.pipeline_mode<synchronous>, transform_indices = @transform_8, window_bounds = array<i64: 1, 128>}, {transform_indices = @transform_9, window_bounds = array<i64: 1, 1, 1, 128>}]} {
    %c0_i32 = arith.constant 0 : i32
    %0 = arith.cmpi eq, %arg2, %c0_i32 : i32
    %1 = arith.extui %0 : i1 to i32
    %c0_i32_0 = arith.constant 0 : i32
    %2 = arith.cmpi ne, %1, %c0_i32_0 : i32
    scf.if %2 {
      %cst_25 = arith.constant 0.000000e+00 : f32
      %42 = vector.broadcast %cst_25 : f32 to vector<8x128xf32>
      %c0_26 = arith.constant 0 : index
      %c0_27 = arith.constant 0 : index
      %43 = vector.load %arg13[%c0_26, %c0_27] : memref<8x128xf32, #tpu.memory_space<vmem>>, vector<8x128xf32>
      tpu.vector_store %arg13[%c0_26, %c0_27], %42 {strides = array<i32>} : memref<8x128xf32, #tpu.memory_space<vmem>>, vector<8x128xf32>,
    } else {
    }
    %c0 = arith.constant 0 : index
    %c0_1 = arith.constant 0 : index
    %c0_2 = arith.constant 0 : index
    %3 = vector.load %arg3[%c0, %c0_1, %c0_2] : memref<1x512x32xbf16, #tpu.memory_space<vmem>>, vector<1x512x32xbf16>
    %4 = vector.shape_cast %3 : vector<1x512x32xbf16> to vector<512x32xbf16>
    %c0_3 = arith.constant 0 : index
    %c0_4 = arith.constant 0 : index
    %5 = vector.load %arg4[%c0_3, %c0_4] : memref<32x128xbf16, #tpu.memory_space<vmem>>, vector<32x128xbf16>
    %cst = arith.constant dense<0.000000e+00> : vector<512x128xf32>
    %6 = tpu.matmul %4, %5, %cst {dimension_numbers = #tpu.dot_dimension_numbers<[1], [0], [0], [1], [0, 0, 1, 1], [], []>} : vector<512x32xbf16>, vector<32x128xbf16>, vector<512x128xf32> -> vector<512x128xf32>
    %c0_5 = arith.constant 0 : index
    %c0_6 = arith.constant 0 : index
    %7 = vector.load %arg5[%c0_5, %c0_6] : memref<1x128xf32, #tpu.memory_space<vmem>>, vector<1x128xf32>
    %8 = vector.broadcast %7 : vector<1x128xf32> to vector<512x128xf32>
    %9 = arith.mulf %6, %8 : vector<512x128xf32>
    %c0_7 = arith.constant 0 : index
    %c0_8 = arith.constant 0 : index
    %10 = vector.load %arg6[%c0_7, %c0_8] : memref<1x128xf32, #tpu.memory_space<vmem>>, vector<1x128xf32>
    %11 = vector.broadcast %10 : vector<1x128xf32> to vector<512x128xf32>
    %12 = arith.addf %9, %11 : vector<512x128xf32>
    %13 = arith.negf %12 : vector<512x128xf32>
    %14 = math.exp %13 : vector<512x128xf32>
    %cst_9 = arith.constant 1.000000e+00 : f32
    %15 = vector.broadcast %cst_9 : f32 to vector<512x128xf32>
    %16 = arith.addf %15, %14 : vector<512x128xf32>
    %17 = arith.divf %15, %16 : vector<512x128xf32>
    %18 = arith.mulf %12, %17 : vector<512x128xf32>
    %19 = arith.truncf %18 : vector<512x128xf32> to vector<512x128xbf16>
    %c0_10 = arith.constant 0 : index
    %c0_11 = arith.constant 0 : index
    %20 = vector.load %arg7[%c0_10, %c0_11] : memref<128x128xbf16, #tpu.memory_space<vmem>>, vector<128x128xbf16>
    %cst_12 = arith.constant dense<0.000000e+00> : vector<512x128xf32>
    %21 = tpu.matmul %19, %20, %cst_12 {dimension_numbers = #tpu.dot_dimension_numbers<[1], [0], [0], [1], [0, 0, 1, 1], [], []>} : vector<512x128xbf16>, vector<128x128xbf16>, vector<512x128xf32> -> vector<512x128xf32>
    %c0_13 = arith.constant 0 : index
    %c0_14 = arith.constant 0 : index
    %22 = vector.load %arg8[%c0_13, %c0_14] : memref<1x128xf32, #tpu.memory_space<vmem>>, vector<1x128xf32>
    %23 = vector.broadcast %22 : vector<1x128xf32> to vector<512x128xf32>
    %24 = arith.mulf %21, %23 : vector<512x128xf32>
    %c0_15 = arith.constant 0 : index
    %c0_16 = arith.constant 0 : index
    %25 = vector.load %arg9[%c0_15, %c0_16] : memref<1x128xf32, #tpu.memory_space<vmem>>, vector<1x128xf32>
    %26 = vector.broadcast %25 : vector<1x128xf32> to vector<512x128xf32>
    %27 = arith.addf %24, %26 : vector<512x128xf32>
    %28 = arith.negf %27 : vector<512x128xf32>
    %29 = math.exp %28 : vector<512x128xf32>
    %cst_17 = arith.constant 1.000000e+00 : f32
    %30 = vector.broadcast %cst_17 : f32 to vector<512x128xf32>
    %31 = arith.addf %30, %29 : vector<512x128xf32>
    %32 = arith.divf %30, %31 : vector<512x128xf32>
    %33 = arith.mulf %27, %32 : vector<512x128xf32>
    %c0_18 = arith.constant 0 : index
    %c0_19 = arith.constant 0 : index
    %34 = vector.load %arg13[%c0_18, %c0_19] : memref<8x128xf32, #tpu.memory_space<vmem>>, vector<8x128xf32>
    %35 = vector.shape_cast %33 : vector<512x128xf32> to vector<64x8x128xf32>
    %cst_20 = arith.constant dense<0.000000e+00> : vector<8x128xf32>
    %36 = vector.multi_reduction <add>, %35, %cst_20 [0] : vector<64x8x128xf32> to vector<8x128xf32>
    %37 = arith.addf %34, %36 : vector<8x128xf32>
    %c0_21 = arith.constant 0 : index
    %c0_22 = arith.constant 0 : index
    %38 = vector.load %arg13[%c0_21, %c0_22] : memref<8x128xf32, #tpu.memory_space<vmem>>, vector<8x128xf32>
    tpu.vector_store %arg13[%c0_21, %c0_22], %37 {strides = array<i32>} : memref<8x128xf32, #tpu.memory_space<vmem>>, vector<8x128xf32>,
    %c0_i32_23 = arith.constant 0 : i32
    %39 = arith.cmpi eq, %arg2, %c0_i32_23 : i32
    %40 = arith.extui %39 : i1 to i32
    %c0_i32_24 = arith.constant 0 : i32
    %41 = arith.cmpi ne, %40, %c0_i32_24 : i32
    scf.if %41 {
      %c0_25 = arith.constant 0 : index
      %c0_26 = arith.constant 0 : index
      %42 = vector.load %arg13[%c0_25, %c0_26] : memref<8x128xf32, #tpu.memory_space<vmem>>, vector<8x128xf32>
      %cst_27 = arith.constant dense<0.000000e+00> : vector<128xf32>
      %43 = vector.multi_reduction <add>, %42, %cst_27 [0] : vector<8x128xf32> to vector<128xf32>
      %44 = vector.shape_cast %43 : vector<128xf32> to vector<1x128xf32>
      %45 = arith.truncf %44 : vector<1x128xf32> to vector<1x128xbf16>
      %c0_28 = arith.constant 0 : index
      %c0_29 = arith.constant 0 : index
      %46 = vector.load %arg10[%c0_28, %c0_29] : memref<128x128xbf16, #tpu.memory_space<vmem>>, vector<128x128xbf16>
      %cst_30 = arith.constant dense<0.000000e+00> : vector<1x128xf32>
      %47 = tpu.matmul %45, %46, %cst_30 {dimension_numbers = #tpu.dot_dimension_numbers<[1], [0], [0], [1], [0, 0, 1, 1], [], []>} : vector<1x128xbf16>, vector<128x128xbf16>, vector<1x128xf32> -> vector<1x128xf32>
      %c0_31 = arith.constant 0 : index
      %c0_32 = arith.constant 0 : index
      %48 = vector.load %arg11[%c0_31, %c0_32] : memref<1x128xf32, #tpu.memory_space<vmem>>, vector<1x128xf32>
      %49 = arith.addf %47, %48 : vector<1x128xf32>
      %c0_33 = arith.constant 0 : index
      %c0_34 = arith.constant 0 : index
      %c0_35 = arith.constant 0 : index
      %c0_36 = arith.constant 0 : index
      %50 = vector.load %arg12[%c0_33, %c0_34, %c0_35, %c0_36] : memref<1x1x1x128xf32, #tpu.memory_space<vmem>>, vector<1x1x1x128xf32>
      %51 = vector.shape_cast %50 : vector<1x1x1x128xf32> to vector<1x128xf32>
      %52 = vector.shape_cast %49 : vector<1x128xf32> to vector<1x1x1x128xf32>
      tpu.vector_store %arg12[%c0_33, %c0_34, %c0_35, %c0_36], %52 {strides = array<i32>} : memref<1x1x1x128xf32, #tpu.memory_space<vmem>>, vector<1x1x1x128xf32>,
    } else {
    }
    return
  }
  func.func @transform_0(%arg0: i32, %arg1: i32, %arg2: i32) -> (i32, i32, i32) {
    %c1_i32 = arith.constant 1 : i32
    %0 = arith.muli %arg1, %c1_i32 : i32
    %1 = arith.addi %0, %arg2 : i32
    %c0_i32 = arith.constant 0 : i32
    %c0_i32_0 = arith.constant 0 : i32
    return %arg0, %1, %c0_i32 : i32, i32, i32
  }
  func.func @transform_1(%arg0: i32, %arg1: i32, %arg2: i32) -> (i32, i32) {
    %c0_i32 = arith.constant 0 : i32
    %c0_i32_0 = arith.constant 0 : i32
    %c0_i32_1 = arith.constant 0 : i32
    return %c0_i32, %c0_i32_0 : i32, i32
  }
  func.func @transform_2(%arg0: i32, %arg1: i32, %arg2: i32) -> (i32, i32) {
    %c0_i32 = arith.constant 0 : i32
    %c0_i32_0 = arith.constant 0 : i32
    %c0_i32_1 = arith.constant 0 : i32
    return %c0_i32, %c0_i32_0 : i32, i32
  }
  func.func @transform_3(%arg0: i32, %arg1: i32, %arg2: i32) -> (i32, i32) {
    %c0_i32 = arith.constant 0 : i32
    %c0_i32_0 = arith.constant 0 : i32
    %c0_i32_1 = arith.constant 0 : i32
    return %c0_i32, %c0_i32_0 : i32, i32
  }
  func.func @transform_4(%arg0: i32, %arg1: i32, %arg2: i32) -> (i32, i32) {
    %c0_i32 = arith.constant 0 : i32
    %c0_i32_0 = arith.constant 0 : i32
    %c0_i32_1 = arith.constant 0 : i32
    return %c0_i32, %c0_i32_0 : i32, i32
  }
  func.func @transform_5(%arg0: i32, %arg1: i32, %arg2: i32) -> (i32, i32) {
    %c0_i32 = arith.constant 0 : i32
    %c0_i32_0 = arith.constant 0 : i32
    %c0_i32_1 = arith.constant 0 : i32
    return %c0_i32, %c0_i32_0 : i32, i32
  }
  func.func @transform_6(%arg0: i32, %arg1: i32, %arg2: i32) -> (i32, i32) {
    %c0_i32 = arith.constant 0 : i32
    %c0_i32_0 = arith.constant 0 : i32
    %c0_i32_1 = arith.constant 0 : i32
    return %c0_i32, %c0_i32_0 : i32, i32
  }
  func.func @transform_7(%arg0: i32, %arg1: i32, %arg2: i32) -> (i32, i32) {
    %c0_i32 = arith.constant 0 : i32
    %c0_i32_0 = arith.constant 0 : i32
    %c0_i32_1 = arith.constant 0 : i32
    return %c0_i32, %c0_i32_0 : i32, i32
  }
  func.func @transform_8(%arg0: i32, %arg1: i32, %arg2: i32) -> (i32, i32) {
    %c0_i32 = arith.constant 0 : i32
    %c0_i32_0 = arith.constant 0 : i32
    %c0_i32_1 = arith.constant 0 : i32
    return %c0_i32, %c0_i32_0 : i32, i32
  }
  func.func @transform_9(%arg0: i32, %arg1: i32, %arg2: i32) -> (i32, i32, i32, i32) {
    %c0_i32 = arith.constant 0 : i32
    %c0_i32_0 = arith.constant 0 : i32
    %c0_i32_1 = arith.constant 0 : i32
    return %arg0, %arg1, %c0_i32, %c0_i32_0 : i32, i32, i32, i32
  }
}

</mosaic_0001>

<bundles_post_ra>
// kernel: model_forward.1
= control target key start
LH: loop header
LB: loop body
LE: loop exit
PB: predicated region body
PF: predicated region fallthrough
CT: control target
= control target key end

     0   :  { %s3976_s30 = smov 0   ;;  %s3978_s10 = smov 0   ;;  %s4956_s0 = inlined_call_operand.vmem [shape: bf16[2,512,32], index: 0, kind: input, shape index: {}]   ;;  %s4957_s1 = inlined_call_operand.vmem [shape: bf16[32,128], index: 1, kind: input, shape index: {}]   ;;  %s4958_s2 = inlined_call_operand.vmem [shape: f32[1,128], index: 2, kind: input, shape index: {}]   ;;  %s4959_s3 = inlined_call_operand.vmem [shape: f32[1,128], index: 3, kind: input, shape index: {}]   ;;  %s4960_s4 = inlined_call_operand.vmem [shape: bf16[128,128], index: 4, kind: input, shape index: {}]   ;;  %s4961_s5 = inlined_call_operand.vmem [shape: f32[1,128], index: 5, kind: input, shape index: {}]   ;;  %s4962_s6 = inlined_call_operand.vmem [shape: f32[1,128], index: 6, kind: input, shape index: {}]   ;;  %s4963_s7 = inlined_call_operand.vmem [shape: bf16[128,128], index: 7, kind: input, shape index: {}]   ;;  %s4964_s8 = inlined_call_operand.vmem [shape: f32[1,128], index: 8, kind: input, shape index: {}]   ;;  %s4965_s9 = inlined_call_operand.vmem [shape: f32[2,1,1,128], index: 9, kind: output, shape index: {}]  }
   0x1   :  { %s3980_s11 = smov 0  }
   0x2 LB: > { %s38_s12 = sadd.s32 1, %s3918_s10  ;;  %p2837_p0 = scmp.ge.s32.totalorder %s3922_s11, 1  ;;  %s3922_s11 = sphi %s3980_s11, %s19_s11   ;;  %s3918_s10 = sphi %s3978_s10, %s4967_s10   ;;  %s3914_s30 = sphi %s3976_s30, %s4966_s30  }
   0x3   : > { %p40_p1 = scmp.ge.s32.totalorder %s38_s12, 2  ;;  %p319_p2 = scmp.lt.s32.totalorder %s3922_s11, 3 }
   0x5   : > { %s4969_s12 = smov (%p40_p1, %s38_s12), 0  ;;  %p320_p3 = pnand %p2837_p0, %p319_p2 }
   0x6   : > { %v3334_v0 = vld [vmem:[%s4957_s1] sm:$0xff] (!%p320_p3)   ;;  %p363_p4 = scmp.lt.s32.totalorder (!%p320_p3), %s3914_s30, 1  ;;  %v3335_v1 = vld [vmem:[%s4957_s1 + $0x8] sm:$0xff] (!%p320_p3)   ;;  %vm625_vm0 = vcmask (!%p320_p3), 261120   ;;  %v3370_v31 = vld [vmem:[%s4960_s4 + $0x10] sm:$0xff] (!%p320_p3)   ;;  %vm3925_vm1 = vmmov (!%p320_p3), 0  }
   0x7   : > { %323 = sbr.rel (%p320_p3) target bundleno = 881 (0x371), region = 56  ;;  %3140 = vmatprep.subr.bf16.mxu0 (!%p320_p3), %v3334_v0  ;;  %v3368_v27 = vld [vmem:[%s4960_s4] sm:$0xff] (!%p320_p3)   ;;  %v3369_v29 = vld [vmem:[%s4960_s4 + $0x8] sm:$0xff] (!%p320_p3)   ;;  %v3371_v34 = vld [vmem:[%s4960_s4 + $0x18] sm:$0xff] (!%p320_p3)  }
   0x8   : > { %3141 = vmatpush3.bf16.msra.mxu0 (!%p320_p3), %v3334_v0  ;;  %3208 = vmatprep.subr.bf16.mxu1 (!%p320_p3), %v3368_v27  ;;  %v3372_v35 = vld [vmem:[%s4960_s4 + $0x20] sm:$0xff] (!%p320_p3)   ;;  %v3373_v38 = vld [vmem:[%s4960_s4 + $0x28] sm:$0xff] (!%p320_p3)   ;;  %v3374_v39 = vld [vmem:[%s4960_s4 + $0x30] sm:$0xff] (!%p320_p3)  }
   0x9   : > { %3142 = vmatprep.subr.bf16.mxu0 (!%p320_p3), %v3335_v1  ;;  %3209 = vmatpush3.bf16.msra.mxu1 (!%p320_p3), %v3368_v27  ;;  %v3375_v41 = vld [vmem:[%s4960_s4 + $0x38] sm:$0xff] (!%p320_p3)   ;;  %v4099_v42 = vld [vmem:[%s4958_s2] ss:$0 sm:$0xff] (!%p320_p3) }
   0xa   : > { %3210 = vmatprep.subr.bf16.mxu1 (!%p320_p3), %v3369_v29  ;;  %v4104_v44 = vld [vmem:[%s4959_s3] ss:$0 sm:$0xff] (!%p320_p3) }
   0xc   : > { %3143 = vmatpush3.bf16.msra.mxu0 (!%p320_p3), %v3335_v1 }
   0xd   : > { %3211 = vmatpush3.bf16.msra.mxu1 (!%p320_p3), %v3369_v29 }
   0xe   : > { %s4971_s30 = smov (!%p363_p4, %s3914_s30), 1  ;;  %3212 = vmatprep.subr.bf16.mxu1 %v3370_v31 }
   0xf   : > { %s3056_s17 = sshll.u32 %s4971_s30, 8  ;;  %s378_s23 = scalar_lea.vmem %s4965_s9, %s4971_s30 }
  0x10   : > { %s4006_s20 = scalar_lea.vmem %s4956_s0, %s3056_s17 }
  0x11   : > { %v3336_v2 = vld [vmem:[%s4006_s20] sm:$0xff]   ;;  %v3337_v3 = vld [vmem:[%s4006_s20 + $0x8] sm:$0xff]   ;;  %v3338_v4 = vld [vmem:[%s4006_s20 + $0x10] sm:$0xff]   ;;  %3213 = vmatpush3.bf16.msra.mxu1 %v3370_v31 }
  0x12   : > { %3144 = vmatprep.mubr.msk.bf16.mxu0 %vm625_vm0, %v3336_v2  ;;  %v3339_v5 = vld [vmem:[%s4006_s20 + $0x18] sm:$0xff]   ;;  %v3340_v6 = vld [vmem:[%s4006_s20 + $0x20] sm:$0xff]   ;;  %v3341_v7 = vld [vmem:[%s4006_s20 + $0x28] sm:$0xff]   ;;  %3214 = vmatprep.subr.bf16.mxu1 %v3371_v34 }
  0x13   : > { %3145 = vmatmul.mubr.msk.bf16.vlgmr.msra.gmra.mrb[0].mxu0 %vm625_vm0, %v3337_v3  ;;  %v3342_v8 = vld [vmem:[%s4006_s20 + $0x30] sm:$0xff]   ;;  %v3343_v9 = vld [vmem:[%s4006_s20 + $0x38] sm:$0xff]   ;;  %v3344_v10 = vld [vmem:[%s4006_s20 + $0x40] sm:$0xff]  }
  0x14   : > { %3148 = vmatprep.mubr.msk.bf16.mxu0 %vm625_vm0, %v3338_v4  ;;  %v3345_v11 = vld [vmem:[%s4006_s20 + $0x48] sm:$0xff]   ;;  %v3346_v12 = vld [vmem:[%s4006_s20 + $0x50] sm:$0xff]   ;;  %v3347_v13 = vld [vmem:[%s4006_s20 + $0x58] sm:$0xff]  }
  0x15   : > { %v3348_v14 = vld [vmem:[%s4006_s20 + $0x60] sm:$0xff]   ;;  %v3349_v15 = vld [vmem:[%s4006_s20 + $0x68] sm:$0xff]   ;;  %v3350_v16 = vld [vmem:[%s4006_s20 + $0x70] sm:$0xff]   ;;  %3215 = vmatpush3.bf16.msra.mxu1 %v3371_v34 }
  0x16   : > { %v3351_v17 = vld [vmem:[%s4006_s20 + $0x78] sm:$0xff]   ;;  %v3352_v18 = vld [vmem:[%s4006_s20 + $0x80] sm:$0xff]   ;;  %v3353_v19 = vld [vmem:[%s4006_s20 + $0x88] sm:$0xff]   ;;  %3216 = vmatprep.subr.bf16.mxu1 %v3372_v35 }
  0x17   : > { %v3354_v20 = vld [vmem:[%s4006_s20 + $0x90] sm:$0xff]   ;;  %v3355_v21 = vld [vmem:[%s4006_s20 + $0x98] sm:$0xff]   ;;  %v3356_v22 = vld [vmem:[%s4006_s20 + $0xa0] sm:$0xff]  }
  0x18   : > { %v3357_v23 = vld [vmem:[%s4006_s20 + $0xa8] sm:$0xff]   ;;  %v3358_v24 = vld [vmem:[%s4006_s20 + $0xb0] sm:$0xff]   ;;  %v3359_v25 = vld [vmem:[%s4006_s20 + $0xb8] sm:$0xff]  }
  0x19   : > { %v3360_v26 = vld [vmem:[%s4006_s20 + $0xc0] sm:$0xff]   ;;  %v3361_v28 = vld [vmem:[%s4006_s20 + $0xc8] sm:$0xff]   ;;  %v3362_v30 = vld [vmem:[%s4006_s20 + $0xd0] sm:$0xff]   ;;  %3217 = vmatpush3.bf16.msra.mxu1 %v3372_v35 }
  0x1a   : > { %v3363_v32 = vld [vmem:[%s4006_s20 + $0xd8] sm:$0xff]   ;;  %v3364_v33 = vld [vmem:[%s4006_s20 + $0xe0] sm:$0xff]   ;;  %v3365_v36 = vld [vmem:[%s4006_s20 + $0xe8] sm:$0xff]   ;;  %3218 = vmatprep.subr.bf16.mxu1 %v3373_v38 }
  0x1b   : > { %3149 = vmatmul.mubr.msk.bf16.gmra.mrb[4].mxu0 %vm625_vm0, %v3339_v5  ;;  %v3366_v37 = vld [vmem:[%s4006_s20 + $0xf0] sm:$0xff]   ;;  %v3367_v40 = vld [vmem:[%s4006_s20 + $0xf8] sm:$0xff]  }
  0x1c   : > { %3152 = vmatprep.mubr.msk.bf16.mxu0 %vm625_vm0, %v3340_v6 }
  0x1d   : > { %3219 = vmatpush3.bf16.msra.mxu1 %v3373_v38 }
  0x1e   : > { %3220 = vmatprep.subr.bf16.mxu1 %v3374_v39 }
  0x21   : > { %3221 = vmatpush3.bf16.msra.mxu1 %v3374_v39 }
  0x22   : > { %3222 = vmatprep.subr.bf16.mxu1 %v3375_v41 }
  0x23   : > { %3153 = vmatmul.mubr.msk.bf16.gmra.mrb[8].mxu0 %vm625_vm0, %v3341_v7 }
  0x24   : > { %3156 = vmatprep.mubr.msk.bf16.mxu0 %vm625_vm0, %v3342_v8 }
  0x25   : > { %3223 = vmatpush3.bf16.msra.mxu1 %v3375_v41 }
  0x2b   : > { %3157 = vmatmul.mubr.msk.bf16.gmra.mrb[12].mxu0 %vm625_vm0, %v3343_v9 }
  0x2c   : > { %3160 = vmatprep.mubr.msk.bf16.mxu0 %vm625_vm0, %v3344_v10 }
  0x33   : > { %3161 = vmatmul.mubr.msk.bf16.gmra.mrb[16].mxu0 %vm625_vm0, %v3345_v11 }
  0x34   : > { %3164 = vmatprep.mubr.msk.bf16.mxu0 %vm625_vm0, %v3346_v12 }
  0x3b   : > { %3165 = vmatmul.mubr.msk.bf16.gmra.mrb[20].mxu0 %vm625_vm0, %v3347_v13 }
  0x3c   : > { %3168 = vmatprep.mubr.msk.bf16.mxu0 %vm625_vm0, %v3348_v14 }
  0x43   : > { %3169 = vmatmul.mubr.msk.bf16.gmra.mrb[24].mxu0 %vm625_vm0, %v3349_v15 }
  0x44   : > { %3172 = vmatprep.mubr.msk.bf16.mxu0 %vm625_vm0, %v3350_v16 }
  0x4b   : > { %3173 = vmatmul.mubr.msk.bf16.gmra.mrb[28].mxu0 %vm625_vm0, %v3351_v17 }
  0x4c   : > { %3176 = vmatprep.mubr.msk.bf16.mxu0 %vm625_vm0, %v3352_v18 }
  0x53   : > { %3177 = vmatmul.mubr.msk.bf16.gmra.mrb[32].mxu0 %vm625_vm0, %v3353_v19 }
  0x54   : > { %3180 = vmatprep.mubr.msk.bf16.mxu0 %vm625_vm0, %v3354_v20 }
  0x5b   : > { %3181 = vmatmul.mubr.msk.bf16.gmra.mrb[36].mxu0 %vm625_vm0, %v3355_v21 }
  0x5c   : > { %3184 = vmatprep.mubr.msk.bf16.mxu0 %vm625_vm0, %v3356_v22 }
  0x63   : > { %3185 = vmatmul.mubr.msk.bf16.gmra.mrb[40].mxu0 %vm625_vm0, %v3357_v23 }
  0x64   : > { %3188 = vmatprep.mubr.msk.bf16.mxu0 %vm625_vm0, %v3358_v24 }
  0x6b   : > { %3189 = vmatmul.mubr.msk.bf16.gmra.mrb[44].mxu0 %vm625_vm0, %v3359_v25 }
  0x6c   : > { %3192 = vmatprep.mubr.msk.bf16.mxu0 %vm625_vm0, %v3360_v26 }
  0x73   : > { %3193 = vmatmul.mubr.msk.bf16.gmra.mrb[48].mxu0 %vm625_vm0, %v3361_v28 }
  0x74   : > { %3196 = vmatprep.mubr.msk.bf16.mxu0 %vm625_vm0, %v3362_v30 }
  0x7b   : > { %3197 = vmatmul.mubr.msk.bf16.gmra.mrb[52].mxu0 %vm625_vm0, %v3363_v32 }
  0x7c   : > { %3200 = vmatprep.mubr.msk.bf16.mxu0 %vm625_vm0, %v3364_v33 }
  0x83   : > { %3201 = vmatmul.mubr.msk.bf16.gmra.mrb[56].mxu0 %vm625_vm0, %v3365_v36 }
  0x84   : > { %3204 = vmatprep.mubr.msk.bf16.mxu0 %vm625_vm0, %v3366_v37 }
  0x8b   : > { %3205 = vmatmul.mubr.msk.bf16.gmra.mrb[60].mxu0 %vm625_vm0, %v3367_v40 }
  0xe6   : > { %v3146_v43 = vpop.f32.mrb[0].mxu0 }
  0xe7   : > { %v1020_v45 = vmul.f32 %v3146_v43, %v4099_v42  ;;  %v756_v46 = vpop.f32.mrb[1].mxu0 }
  0xe8   : > { %v1018_v47 = vmul.f32 %v4099_v42, %v756_v46  ;;  %v3147_v48 = vpop.f32.mrb[2].mxu0 }
  0xe9   : > { %v4109_v49 = vadd.f32 %v4104_v44, %v1020_v45  ;;  %v1021_v50 = vmul.f32 %v3147_v48, %v4099_v42  ;;  %v759_v51 = vpop.f32.mrb[3].mxu0 }
  0xea   : > { %v4113_v52 = vadd.f32 %v4104_v44, %v1018_v47  ;;  %v1019_v53 = vmul.f32 %v4099_v42, %v759_v51 }
  0xeb   : > { %v2910_v54 = vmul.f32 -1.442695, %v4109_v49  ;;  %v4118_v55 = vadd.f32 %v4104_v44, %v1021_v50 }
  0xec   : > { %v2908_v56 = vmul.f32 -1.442695, %v4113_v52  ;;  %v4122_v57 = vadd.f32 %v4104_v44, %v1019_v53 }
  0xed   : > { %3384 = vpow2.f32 %v2910_v54  ;;  %v2911_v58 = vmul.f32 -1.442695, %v4118_v55 }
  0xee   : > { %3386 = vpow2.f32 %v2908_v56  ;;  %v2909_v59 = vmul.f32 -1.442695, %v4122_v57  ;;  %v3150_v60 = vpop.f32.mrb[4].mxu0 }
  0xef   : > { %3388 = vpow2.f32 %v2911_v58  ;;  %v1024_v61 = vmul.f32 %v3150_v60, %v4099_v42  ;;  %v772_v62 = vpop.f32.mrb[5].mxu0 }
  0xf0   : > { %3390 = vpow2.f32 %v2909_v59  ;;  %v1022_v63 = vmul.f32 %v4099_v42, %v772_v62  ;;  %v3151_v0 = vpop.f32.mrb[6].mxu0 }
  0xf1   : > { %v4129_v1 = vadd.f32 %v4104_v44, %v1024_v61  ;;  %v1025_v2 = vmul.f32 %v3151_v0, %v4099_v42  ;;  %v775_v3 = vpop.f32.mrb[7].mxu0 }
  0xf2   : > { %v4133_v4 = vadd.f32 %v4104_v44, %v1022_v63  ;;  %v1023_v5 = vmul.f32 %v4099_v42, %v775_v3 }
  0xf3   : > { %v2914_v6 = vmul.f32 -1.442695, %v4129_v1  ;;  %v4138_v7 = vadd.f32 %v4104_v44, %v1025_v2 }
  0xf4   : > { %v2912_v8 = vmul.f32 -1.442695, %v4133_v4  ;;  %v4142_v9 = vadd.f32 %v4104_v44, %v1023_v5 }
  0xf5   : > { %3392 = vpow2.f32 %v2914_v6  ;;  %v2915_v10 = vmul.f32 -1.442695, %v4138_v7 }
  0xf6   : > { %3394 = vpow2.f32 %v2912_v8  ;;  %v2913_v11 = vmul.f32 -1.442695, %v4142_v9  ;;  %v3154_v12 = vpop.f32.mrb[8].mxu0 }
  0xf7   : > { %v3385_v13 = vpop.eup %3384  ;;  %3396 = vpow2.f32 %v2915_v10  ;;  %v1028_v14 = vmul.f32 %v3154_v12, %v4099_v42  ;;  %v788_v15 = vpop.f32.mrb[9].mxu0 }
  0xf8   : > { %v3387_v16 = vpop.eup %3386  ;;  %v1347_v17 = vadd.f32 1.0, %v3385_v13  ;;  %3398 = vpow2.f32 %v2913_v11  ;;  %v1026_v18 = vmul.f32 %v4099_v42, %v788_v15  ;;  %v3155_v19 = vpop.f32.mrb[10].mxu0 }
  0xf9   : > { %v3389_v20 = vpop.eup %3388  ;;  %v1345_v21 = vadd.f32 1.0, %v3387_v16  ;;  %v4149_v22 = vadd.f32 %v4104_v44, %v1028_v14  ;;  %v1029_v23 = vmul.f32 %v3155_v19, %v4099_v42  ;;  %v791_v24 = vpop.f32.mrb[11].mxu0 }
  0xfa   : > { %v3391_v25 = vpop.eup %3390  ;;  %3400 = vrcp.f32 %v1347_v17  ;;  %v1348_v26 = vadd.f32 1.0, %v3389_v20  ;;  %v4153_v27 = vadd.f32 %v4104_v44, %v1026_v18  ;;  %v1027_v28 = vmul.f32 %v4099_v42, %v791_v24 }
  0xfb   : > { %3402 = vrcp.f32 %v1345_v21  ;;  %v1346_v29 = vadd.f32 1.0, %v3391_v25  ;;  %v2918_v30 = vmul.f32 -1.442695, %v4149_v22  ;;  %v4158_v31 = vadd.f32 %v4104_v44, %v1029_v23 }
  0xfc   : > { %3404 = vrcp.f32 %v1348_v26  ;;  %v2916_v32 = vmul.f32 -1.442695, %v4153_v27  ;;  %v4162_v33 = vadd.f32 %v4104_v44, %v1027_v28 }
  0xfd   : > { %3406 = vrcp.f32 %v1346_v29  ;;  %v2919_v34 = vmul.f32 -1.442695, %v4158_v31 }
  0xfe   : > { %3408 = vpow2.f32 %v2918_v30  ;;  %v2917_v35 = vmul.f32 -1.442695, %v4162_v33  ;;  %v3158_v36 = vpop.f32.mrb[12].mxu0 }
  0xff   : > { %v3393_v37 = vpop.eup %3392  ;;  %3410 = vpow2.f32 %v2916_v32  ;;  %v1032_v38 = vmul.f32 %v3158_v36, %v4099_v42  ;;  %v804_v39 = vpop.f32.mrb[13].mxu0 }
 0x100   : > { %v3395_v40 = vpop.eup %3394  ;;  %v1351_v41 = vadd.f32 1.0, %v3393_v37  ;;  %3412 = vpow2.f32 %v2919_v34  ;;  %v1030_v43 = vmul.f32 %v4099_v42, %v804_v39  ;;  %v3159_v45 = vpop.f32.mrb[14].mxu0 }
 0x101   : > { %v3397_v46 = vpop.eup %3396  ;;  %v1349_v47 = vadd.f32 1.0, %v3395_v40  ;;  %3414 = vpow2.f32 %v2917_v35  ;;  %v4169_v48 = vadd.f32 %v4104_v44, %v1032_v38  ;;  %v1033_v50 = vmul.f32 %v3159_v45, %v4099_v42  ;;  %v807_v51 = vpop.f32.mrb[15].mxu0 }
 0x102   : > { %v3399_v53 = vpop.eup %3398  ;;  %3416 = vrcp.f32 %v1351_v41  ;;  %v1352_v54 = vadd.f32 1.0, %v3397_v46  ;;  %v4173_v56 = vadd.f32 %v4104_v44, %v1030_v43  ;;  %v1031_v58 = vmul.f32 %v4099_v42, %v807_v51 }
 0x103   : > { %3418 = vrcp.f32 %v1349_v47  ;;  %v1350_v59 = vadd.f32 1.0, %v3399_v53  ;;  %v2922_v60 = vmul.f32 -1.442695, %v4169_v48  ;;  %v4178_v61 = vadd.f32 %v4104_v44, %v1033_v50 }
 0x104   : > { %v3401_v62 = vpop.eup %3400  ;;  %3420 = vrcp.f32 %v1352_v54  ;;  %v2920_v63 = vmul.f32 -1.442695, %v4173_v56  ;;  %v4182_v0 = vadd.f32 %v4104_v44, %v1031_v58 }
 0x105   : > { %v3403_v2 = vpop.eup %3402  ;;  %3422 = vrcp.f32 %v1350_v59  ;;  %v2923_v3 = vmul.f32 -1.442695, %v4178_v61  ;;  %v1539_v11 = vmul.f32 %v3401_v62, %v4109_v49 }
 0x106   : > { %v3405_v5 = vpop.eup %3404  ;;  %3424 = vpow2.f32 %v2922_v60  ;;  %v2921_v6 = vmul.f32 -1.442695, %v4182_v0  ;;  %v3162_v8 = vpop.f32.mrb[16].mxu0  ;;  %v1537_v14 = vmul.f32 %v3403_v2, %v4113_v52 }
 0x107   : > { %v3407_v10 = vpop.eup %3406  ;;  %3426 = vpow2.f32 %v2920_v63  ;;  %v1036_v12 = vmul.f32 %v3162_v8, %v4099_v42  ;;  %v820_v13 = vpop.f32.mrb[17].mxu0  ;;  %v1540_v16 = vmul.f32 %v3405_v5, %v4118_v55 }
 0x108   : > { %v3409_v15 = vpop.eup %3408  ;;  %3428 = vpow2.f32 %v2923_v3  ;;  %v1034_v17 = vmul.f32 %v4099_v42, %v820_v13  ;;  %v3163_v18 = vpop.f32.mrb[18].mxu0  ;;  %v1538_v19 = vmul.f32 %v3407_v10, %v4122_v57 }
 0x109   : > { %v3411_v20 = vpop.eup %3410  ;;  %v1355_v21 = vadd.f32 1.0, %v3409_v15  ;;  %3430 = vpow2.f32 %v2921_v6  ;;  %v4193_v49 = vadd.f32 %v4104_v44, %v1036_v12  ;;  %v1037_v23 = vmul.f32 %v3163_v18, %v4099_v42  ;;  %v823_v24 = vpop.f32.mrb[19].mxu0 }
 0x10a   : > { %v3413_v25 = vpop.eup %3412  ;;  %v1353_v52 = vadd.f32 1.0, %v3411_v20  ;;  %v4197_v26 = vadd.f32 %v4104_v44, %v1034_v17  ;;  %v1035_v55 = vmul.f32 %v4099_v42, %v823_v24  ;;  %v1601_v28 = vpack.c.bf16 %v1538_v19, %v1537_v14 }
 0x10b   : > { %v3415_v29 = vpop.eup %3414  ;;  %3432 = vrcp.f32 %v1355_v21  ;;  %v1356_v57 = vadd.f32 1.0, %v3413_v25  ;;  %v2926_v30 = vmul.f32 -1.442695, %v4193_v49  ;;  %v4202_v32 = vadd.f32 %v4104_v44, %v1037_v23 }
 0x10c   : > { %v3417_v34 = vpop.eup %3416  ;;  %3434 = vrcp.f32 %v1353_v52  ;;  %v1354_v35 = vadd.f32 1.0, %v3415_v29  ;;  %v2924_v36 = vmul.f32 -1.442695, %v4197_v26  ;;  %v4206_v37 = vadd.f32 %v4104_v44, %v1035_v55  ;;  %3224 = vmatprep.mubr.bf16.mxu1 %v1601_v28 }
 0x10d   : > { %v3419_v38 = vpop.eup %3418  ;;  %3436 = vrcp.f32 %v1356_v57  ;;  %v2927_v39 = vmul.f32 -1.442695, %v4202_v32  ;;  %v1602_v40 = vpack.c.bf16 %v1540_v16, %v1539_v11  ;;  %v1543_v47 = vmul.f32 %v3417_v34, %v4129_v1 }
 0x10e   : > { %v3421_v41 = vpop.eup %3420  ;;  %3438 = vrcp.f32 %v1354_v35  ;;  %v2925_v43 = vmul.f32 -1.442695, %v4206_v37  ;;  %v3166_v45 = vpop.f32.mrb[20].mxu0  ;;  %v1541_v50 = vmul.f32 %v3419_v38, %v4133_v4 }
 0x10f   : > { %v3423_v46 = vpop.eup %3422  ;;  %3440 = vpow2.f32 %v2926_v30  ;;  %3225 = vmatmul.mubr.bf16.vlgmr.msra.gmra.mrb[0].mxu1 %v1602_v40  ;;  %v1040_v51 = vmul.f32 %v3166_v45, %v4099_v42  ;;  %v836_v53 = vpop.f32.mrb[21].mxu0  ;;  %v1544_v58 = vmul.f32 %v3421_v41, %v4138_v7 }
 0x110   : > { %v3425_v54 = vpop.eup %3424  ;;  %v1542_v59 = vmul.f32 %v3423_v46, %v4142_v9  ;;  %3442 = vpow2.f32 %v2924_v36  ;;  %v1038_v60 = vmul.f32 %v4099_v42, %v836_v53  ;;  %v3167_v62 = vpop.f32.mrb[22].mxu0 }
 0x111   : > { %v3427_v63 = vpop.eup %3426  ;;  %v1359_v2 = vadd.f32 1.0, %v3425_v54  ;;  %3444 = vpow2.f32 %v2927_v39  ;;  %v4217_v1 = vadd.f32 %v4104_v44, %v1040_v51  ;;  %v1041_v4 = vmul.f32 %v3167_v62, %v4099_v42  ;;  %v839_v3 = vpop.f32.mrb[23].mxu0 }
 0x112   : > { %v3429_v5 = vpop.eup %3428  ;;  %v1357_v6 = vadd.f32 1.0, %v3427_v63  ;;  %3446 = vpow2.f32 %v2925_v43  ;;  %v4221_v7 = vadd.f32 %v4104_v44, %v1038_v60  ;;  %v1039_v9 = vmul.f32 %v4099_v42, %v839_v3 }
 0x113   : > { %v3431_v8 = vpop.eup %3430  ;;  %3448 = vrcp.f32 %v1359_v2  ;;  %v1360_v10 = vadd.f32 1.0, %v3429_v5  ;;  %v2930_v11 = vmul.f32 -1.442695, %v4217_v1  ;;  %v4226_v12 = vadd.f32 %v4104_v44, %v1041_v4 }
 0x114   : > { %3450 = vrcp.f32 %v1357_v6  ;;  %v1358_v13 = vadd.f32 1.0, %v3431_v8  ;;  %v2928_v14 = vmul.f32 -1.442695, %v4221_v7  ;;  %v4230_v15 = vadd.f32 %v4104_v44, %v1039_v9 }
 0x115   : > { %v3433_v16 = vpop.eup %3432  ;;  %3452 = vrcp.f32 %v1360_v10  ;;  %v2931_v17 = vmul.f32 -1.442695, %v4226_v12  ;;  %v1603_v18 = vpack.c.bf16 %v1542_v59, %v1541_v50  ;;  %v1604_v19 = vpack.c.bf16 %v1544_v58, %v1543_v47 }
 0x116   : > { %v3435_v20 = vpop.eup %3434  ;;  %3454 = vrcp.f32 %v1358_v13  ;;  %v2929_v21 = vmul.f32 -1.442695, %v4230_v15  ;;  %v3170_v23 = vpop.f32.mrb[24].mxu0  ;;  %v1547_v45 = vmul.f32 %v3433_v16, %v4149_v22 }
 0x117   : > { %v3437_v24 = vpop.eup %3436  ;;  %3456 = vpow2.f32 %v2930_v11  ;;  %3228 = vmatprep.mubr.bf16.mxu1 %v1603_v18  ;;  %v1044_v25 = vmul.f32 %v3170_v23, %v4099_v42  ;;  %v852_v52 = vpop.f32.mrb[25].mxu0  ;;  %v1545_v28 = vmul.f32 %v3435_v20, %v4153_v27 }
 0x118   : > { %v3439_v55 = vpop.eup %3438  ;;  %v1548_v29 = vmul.f32 %v3437_v24, %v4158_v31  ;;  %3458 = vpow2.f32 %v2928_v14  ;;  %3229 = vmatmul.mubr.bf16.gmra.mrb[4].mxu1 %v1604_v19  ;;  %v1042_v57 = vmul.f32 %v4099_v42, %v852_v52  ;;  %v3171_v30 = vpop.f32.mrb[26].mxu0 }
 0x119   : > { %v3441_v34 = vpop.eup %3440  ;;  %v1546_v35 = vmul.f32 %v3439_v55, %v4162_v33  ;;  %3460 = vpow2.f32 %v2931_v17  ;;  %v4240_v36 = vadd.f32 %v4104_v44, %v1044_v25  ;;  %v1045_v38 = vmul.f32 %v3171_v30, %v4099_v42  ;;  %v855_v39 = vpop.f32.mrb[27].mxu0 }
 0x11a   : > { %v3443_v40 = vpop.eup %3442  ;;  %v1363_v41 = vadd.f32 1.0, %v3441_v34  ;;  %3462 = vpow2.f32 %v2929_v21  ;;  %v4244_v27 = vadd.f32 %v4104_v44, %v1042_v57  ;;  %v1043_v31 = vmul.f32 %v4099_v42, %v855_v39 }
 0x11b   : > { %v3445_v43 = vpop.eup %3444  ;;  %v1361_v46 = vadd.f32 1.0, %v3443_v40  ;;  %v4249_v33 = vadd.f32 %v4104_v44, %v1045_v38  ;;  %v1605_v47 = vpack.c.bf16 %v1546_v35, %v1545_v28  ;;  %v2934_v53 = vmul.f32 -1.442695, %v4240_v36 }
 0x11c   : > { %v3447_v50 = vpop.eup %3446  ;;  %3464 = vrcp.f32 %v1363_v41  ;;  %v1364_v51 = vadd.f32 1.0, %v3445_v43  ;;  %v4253_v54 = vadd.f32 %v4104_v44, %v1043_v31  ;;  %v2932_v60 = vmul.f32 -1.442695, %v4244_v27 }
 0x11d   : > { %v3449_v58 = vpop.eup %3448  ;;  %3466 = vrcp.f32 %v1361_v46  ;;  %v1362_v59 = vadd.f32 1.0, %v3447_v50  ;;  %3232 = vmatprep.mubr.bf16.mxu1 %v1605_v47  ;;  %v1606_v22 = vpack.c.bf16 %v1548_v29, %v1547_v45  ;;  %v2935_v63 = vmul.f32 -1.442695, %v4249_v33 }
 0x11e   : > { %v3451_v62 = vpop.eup %3450  ;;  %3468 = vrcp.f32 %v1364_v51  ;;  %v3174_v2 = vpop.f32.mrb[28].mxu0  ;;  %v2933_v3 = vmul.f32 -1.442695, %v4253_v54  ;;  %v1551_v8 = vmul.f32 %v3449_v58, %v4169_v48 }
 0x11f   : > { %v3453_v4 = vpop.eup %3452  ;;  %3470 = vrcp.f32 %v1362_v59  ;;  %v1048_v5 = vmul.f32 %v3174_v2, %v4099_v42  ;;  %v868_v6 = vpop.f32.mrb[29].mxu0  ;;  %v1549_v24 = vmul.f32 %v3451_v62, %v4173_v56 }
 0x120   : > { %v3455_v9 = vpop.eup %3454  ;;  %v1552_v10 = vmul.f32 %v3453_v4, %v4178_v61  ;;  %3472 = vpow2.f32 %v2934_v53  ;;  %3233 = vmatmul.mubr.bf16.gmra.mrb[8].mxu1 %v1606_v22  ;;  %v1046_v11 = vmul.f32 %v4099_v42, %v868_v6  ;;  %v3175_v13 = vpop.f32.mrb[30].mxu0 }
 0x121   : > { %v3457_v14 = vpop.eup %3456  ;;  %v1550_v16 = vmul.f32 %v3455_v9, %v4182_v0  ;;  %3474 = vpow2.f32 %v2932_v60  ;;  %v4264_v17 = vadd.f32 %v4104_v44, %v1048_v5  ;;  %v1049_v18 = vmul.f32 %v3175_v13, %v4099_v42  ;;  %v871_v19 = vpop.f32.mrb[31].mxu0 }
 0x122   : > { %v3459_v20 = vpop.eup %3458  ;;  %v1367_v21 = vadd.f32 1.0, %v3457_v14  ;;  %3476 = vpow2.f32 %v2935_v63  ;;  %v4268_v48 = vadd.f32 %v4104_v44, %v1046_v11  ;;  %v1047_v61 = vmul.f32 %v4099_v42, %v871_v19 }
 0x123   : > { %v3461_v23 = vpop.eup %3460  ;;  %v1365_v25 = vadd.f32 1.0, %v3459_v20  ;;  %3478 = vpow2.f32 %v2933_v3  ;;  %v4273_v0 = vadd.f32 %v4104_v44, %v1049_v18  ;;  %v2938_v28 = vmul.f32 -1.442695, %v4264_v17 }
 0x124   : > { %v3463_v52 = vpop.eup %3462  ;;  %3480 = vrcp.f32 %v1367_v21  ;;  %v1368_v55 = vadd.f32 1.0, %v3461_v23  ;;  %v4277_v29 = vadd.f32 %v4104_v44, %v1047_v61  ;;  %v2936_v30 = vmul.f32 -1.442695, %v4268_v48 }
 0x125   : > { %3482 = vrcp.f32 %v1365_v25  ;;  %v1366_v57 = vadd.f32 1.0, %v3463_v52  ;;  %v1607_v34 = vpack.c.bf16 %v1550_v16, %v1549_v24  ;;  %v2939_v56 = vmul.f32 -1.442695, %v4273_v0 }
 0x126   : > { %v3465_v35 = vpop.eup %3464  ;;  %3484 = vrcp.f32 %v1368_v55  ;;  %v1608_v38 = vpack.c.bf16 %v1552_v10, %v1551_v8  ;;  %v3178_v39 = vpop.f32.mrb[32].mxu0  ;;  %v2937_v41 = vmul.f32 -1.442695, %v4277_v29 }
 0x127   : > { %v3467_v40 = vpop.eup %3466  ;;  %3486 = vrcp.f32 %v1366_v57  ;;  %3236 = vmatprep.mubr.bf16.mxu1 %v1607_v34  ;;  %v1052_v31 = vmul.f32 %v3178_v39, %v4099_v42  ;;  %v884_v43 = vpop.f32.mrb[33].mxu0  ;;  %v1555_v4 = vmul.f32 %v3465_v35, %v4193_v49 }
 0x128   : > { %v3469_v45 = vpop.eup %3468  ;;  %v1553_v46 = vmul.f32 %v3467_v40, %v4197_v26  ;;  %3488 = vpow2.f32 %v2938_v28  ;;  %3237 = vmatmul.mubr.bf16.gmra.mrb[12].mxu1 %v1608_v38  ;;  %v1050_v47 = vmul.f32 %v4099_v42, %v884_v43  ;;  %v3179_v50 = vpop.f32.mrb[34].mxu0 }
 0x129   : > { %v3471_v51 = vpop.eup %3470  ;;  %v1556_v53 = vmul.f32 %v3469_v45, %v4202_v32  ;;  %3490 = vpow2.f32 %v2936_v30  ;;  %v4287_v58 = vadd.f32 %v4104_v44, %v1052_v31  ;;  %v1053_v59 = vmul.f32 %v3179_v50, %v4099_v42  ;;  %v887_v60 = vpop.f32.mrb[35].mxu0 }
 0x12a   : > { %v3473_v22 = vpop.eup %3472  ;;  %v1554_v62 = vmul.f32 %v3471_v51, %v4206_v37  ;;  %3492 = vpow2.f32 %v2939_v56  ;;  %v4292_v26 = vadd.f32 %v4104_v44, %v1050_v47  ;;  %v1051_v63 = vmul.f32 %v4099_v42, %v887_v60 }
 0x12b   : > { %v3475_v2 = vpop.eup %3474  ;;  %v1371_v32 = vadd.f32 1.0, %v3473_v22  ;;  %3494 = vpow2.f32 %v2937_v41  ;;  %v4297_v3 = vadd.f32 %v4104_v44, %v1053_v59  ;;  %v2942_v11 = vmul.f32 -1.442695, %v4287_v58 }
 0x12c   : > { %v3477_v5 = vpop.eup %3476  ;;  %v1369_v6 = vadd.f32 1.0, %v3475_v2  ;;  %v4300_v9 = vadd.f32 %v4104_v44, %v1051_v63  ;;  %v1609_v37 = vpack.c.bf16 %v1554_v62, %v1553_v46  ;;  %v1610_v13 = vpack.c.bf16 %v1556_v53, %v1555_v4 }
 0x12d   : > { %v3479_v8 = vpop.eup %3478  ;;  %3496 = vrcp.f32 %v1371_v32  ;;  %v1372_v10 = vadd.f32 1.0, %v3477_v5  ;;  %v2940_v16 = vmul.f32 -1.442695, %v4292_v26  ;;  %v2943_v20 = vmul.f32 -1.442695, %v4297_v3 }
 0x12e   : > { %v3481_v14 = vpop.eup %3480  ;;  %3498 = vrcp.f32 %v1369_v6  ;;  %v1370_v49 = vadd.f32 1.0, %v3479_v8  ;;  %3240 = vmatprep.mubr.bf16.mxu1 %v1609_v37  ;;  %v3182_v18 = vpop.f32.mrb[36].mxu0  ;;  %v2941_v24 = vmul.f32 -1.442695, %v4300_v9 }
 0x12f   : > { %v3483_v19 = vpop.eup %3482  ;;  %3500 = vrcp.f32 %v1372_v10  ;;  %v1056_v21 = vmul.f32 %v3182_v18, %v4099_v42  ;;  %v900_v61 = vpop.f32.mrb[37].mxu0  ;;  %v1559_v45 = vmul.f32 %v3481_v14, %v4217_v1 }
 0x130   : > { %v3485_v23 = vpop.eup %3484  ;;  %3502 = vrcp.f32 %v1370_v49  ;;  %3241 = vmatmul.mubr.bf16.gmra.mrb[16].mxu1 %v1610_v13  ;;  %v1054_v25 = vmul.f32 %v4099_v42, %v900_v61  ;;  %v3183_v52 = vpop.f32.mrb[38].mxu0  ;;  %v1557_v41 = vmul.f32 %v3483_v19, %v4221_v7 }
 0x131   : > { %v3487_v55 = vpop.eup %3486  ;;  %v1560_v28 = vmul.f32 %v3485_v23, %v4226_v12  ;;  %3504 = vpow2.f32 %v2942_v11  ;;  %v4310_v57 = vadd.f32 %v4104_v44, %v1056_v21  ;;  %v1057_v30 = vmul.f32 %v3183_v52, %v4099_v42  ;;  %v903_v34 = vpop.f32.mrb[39].mxu0 }
 0x132   : > { %v3489_v35 = vpop.eup %3488  ;;  %v1558_v56 = vmul.f32 %v3487_v55, %v4230_v15  ;;  %3506 = vpow2.f32 %v2940_v16  ;;  %v4315_v38 = vadd.f32 %v4104_v44, %v1054_v25  ;;  %v1055_v39 = vmul.f32 %v4099_v42, %v903_v34 }
 0x133   : > { %v3491_v40 = vpop.eup %3490  ;;  %v1375_v12 = vadd.f32 1.0, %v3489_v35  ;;  %3508 = vpow2.f32 %v2943_v20  ;;  %v4320_v31 = vadd.f32 %v4104_v44, %v1057_v30  ;;  %v2946_v51 = vmul.f32 -1.442695, %v4310_v57 }
 0x134   : > { %v3493_v43 = vpop.eup %3492  ;;  %v1373_v46 = vadd.f32 1.0, %v3491_v40  ;;  %3510 = vpow2.f32 %v2941_v24  ;;  %v4324_v15 = vadd.f32 %v4104_v44, %v1055_v39  ;;  %v1611_v53 = vpack.c.bf16 %v1558_v56, %v1557_v41 }
 0x135   : > { %v3495_v47 = vpop.eup %3494  ;;  %3512 = vrcp.f32 %v1375_v12  ;;  %v1376_v50 = vadd.f32 1.0, %v3493_v43  ;;  %v2944_v59 = vmul.f32 -1.442695, %v4315_v38  ;;  %v1612_v60 = vpack.c.bf16 %v1560_v28, %v1559_v45 }
 0x136   : > { %3514 = vrcp.f32 %v1373_v46  ;;  %v1374_v7 = vadd.f32 1.0, %v3495_v47  ;;  %v3186_v22 = vpop.f32.mrb[40].mxu0  ;;  %v2947_v1 = vmul.f32 -1.442695, %v4320_v31  ;;  %3244 = vmatprep.mubr.bf16.mxu1 %v1611_v53  ;;  %v2945_v32 = vmul.f32 -1.442695, %v4324_v15 }
 0x137   : > { %v3497_v62 = vpop.eup %3496  ;;  %3516 = vrcp.f32 %v1376_v50  ;;  %v1060_v63 = vmul.f32 %v3186_v22, %v4099_v42  ;;  %v916_v2 = vpop.f32.mrb[41].mxu0 }
 0x138   : > { %v3499_v4 = vpop.eup %3498  ;;  %3518 = vrcp.f32 %v1374_v7  ;;  %3245 = vmatmul.mubr.bf16.gmra.mrb[20].mxu1 %v1612_v60  ;;  %v1058_v5 = vmul.f32 %v4099_v42, %v916_v2  ;;  %v3187_v6 = vpop.f32.mrb[42].mxu0  ;;  %v1563_v23 = vmul.f32 %v3497_v62, %v4240_v36 }
 0x139   : > { %v3501_v37 = vpop.eup %3500  ;;  %v1561_v8 = vmul.f32 %v3499_v4, %v4244_v27  ;;  %3520 = vpow2.f32 %v2946_v51  ;;  %v4334_v10 = vadd.f32 %v4104_v44, %v1060_v63  ;;  %v1061_v11 = vmul.f32 %v3187_v6, %v4099_v42  ;;  %v919_v13 = vpop.f32.mrb[43].mxu0 }
 0x13a   : > { %v3503_v14 = vpop.eup %3502  ;;  %v1564_v49 = vmul.f32 %v3501_v37, %v4249_v33  ;;  %3522 = vpow2.f32 %v2944_v59  ;;  %v4339_v16 = vadd.f32 %v4104_v44, %v1058_v5  ;;  %v1059_v18 = vmul.f32 %v4099_v42, %v919_v13 }
 0x13b   : > { %v3505_v19 = vpop.eup %3504  ;;  %v1562_v20 = vmul.f32 %v3503_v14, %v4253_v54  ;;  %3524 = vpow2.f32 %v2947_v1  ;;  %v2950_v27 = vmul.f32 -1.442695, %v4334_v10  ;;  %v4345_v21 = vadd.f32 %v4104_v44, %v1061_v11 }
 0x13c   : > { %v3507_v61 = vpop.eup %3506  ;;  %v1379_v24 = vadd.f32 1.0, %v3505_v19  ;;  %3526 = vpow2.f32 %v2945_v32  ;;  %v4349_v33 = vadd.f32 %v4104_v44, %v1059_v18  ;;  %v2948_v30 = vmul.f32 -1.442695, %v4339_v16 }
 0x13d   : > { %v3509_v25 = vpop.eup %3508  ;;  %v1377_v52 = vadd.f32 1.0, %v3507_v61  ;;  %3528 = vpow2.f32 %v2950_v27  ;;  %v1613_v55 = vpack.c.bf16 %v1562_v20, %v1561_v8  ;;  %v1614_v34 = vpack.c.bf16 %v1564_v49, %v1563_v23 }
 0x13e   : > { %v3511_v28 = vpop.eup %3510  ;;  %3530 = vrcp.f32 %v1379_v24  ;;  %v1380_v54 = vadd.f32 1.0, %v3509_v25  ;;  %v3190_v35 = vpop.f32.mrb[44].mxu0  ;;  %v2951_v36 = vmul.f32 -1.442695, %v4345_v21  ;;  %v2949_v43 = vmul.f32 -1.442695, %v4349_v33 }
 0x13f   : > { %v3513_v56 = vpop.eup %3512  ;;  %3532 = vrcp.f32 %v1377_v52  ;;  %v1378_v39 = vadd.f32 1.0, %v3511_v28  ;;  %3248 = vmatprep.mubr.bf16.mxu1 %v1613_v55  ;;  %v1064_v40 = vmul.f32 %v3190_v35, %v4099_v42  ;;  %v932_v41 = vpop.f32.mrb[45].mxu0 }
 0x140   : > { %v3515_v12 = vpop.eup %3514  ;;  %3534 = vrcp.f32 %v1380_v54  ;;  %3249 = vmatmul.mubr.bf16.gmra.mrb[24].mxu1 %v1614_v34  ;;  %v1062_v45 = vmul.f32 %v4099_v42, %v932_v41  ;;  %v3191_v46 = vpop.f32.mrb[46].mxu0  ;;  %v1567_v32 = vmul.f32 %v3513_v56, %v4264_v17 }
 0x141   : > { %v3517_v47 = vpop.eup %3516  ;;  %3536 = vrcp.f32 %v1378_v39  ;;  %v4357_v50 = vadd.f32 %v4104_v44, %v1064_v40  ;;  %v1065_v51 = vmul.f32 %v3191_v46, %v4099_v42  ;;  %v935_v53 = vpop.f32.mrb[47].mxu0  ;;  %v1565_v59 = vmul.f32 %v3515_v12, %v4268_v48 }
 0x142   : > { %v3519_v7 = vpop.eup %3518  ;;  %v1568_v60 = vmul.f32 %v3517_v47, %v4273_v0  ;;  %3538 = vpow2.f32 %v2948_v30  ;;  %v1063_v22 = vmul.f32 %v4099_v42, %v935_v53  ;;  %v4366_v2 = vadd.f32 %v4104_v44, %v1062_v45 }
 0x143   : > { %v3521_v62 = vpop.eup %3520  ;;  %v1566_v1 = vmul.f32 %v3519_v7, %v4277_v29  ;;  %3540 = vpow2.f32 %v2951_v36  ;;  %v2954_v63 = vmul.f32 -1.442695, %v4357_v50  ;;  %v4370_v48 = vadd.f32 %v4104_v44, %v1065_v51 }
 0x144   : > { %v3523_v4 = vpop.eup %3522  ;;  %v1383_v5 = vadd.f32 1.0, %v3521_v62  ;;  %3542 = vpow2.f32 %v2949_v43  ;;  %v4373_v37 = vadd.f32 %v4104_v44, %v1063_v22  ;;  %v1616_v13 = vpack.c.bf16 %v1568_v60, %v1567_v32 }
 0x145   : > { %v3525_v0 = vpop.eup %3524  ;;  %v1381_v6 = vadd.f32 1.0, %v3523_v4  ;;  %3544 = vpow2.f32 %v2954_v63  ;;  %v1615_v29 = vpack.c.bf16 %v1566_v1, %v1565_v59  ;;  %v2952_v18 = vmul.f32 -1.442695, %v4366_v2 }
 0x146   : > { %v3527_v8 = vpop.eup %3526  ;;  %3546 = vrcp.f32 %v1383_v5  ;;  %v1384_v11 = vadd.f32 1.0, %v3525_v0  ;;  %v3194_v14 = vpop.f32.mrb[48].mxu0  ;;  %v2955_v23 = vmul.f32 -1.442695, %v4370_v48  ;;  %v2953_v55 = vmul.f32 -1.442695, %v4373_v37 }
 0x147   : > { %v3529_v49 = vpop.eup %3528  ;;  %3548 = vrcp.f32 %v1381_v6  ;;  %v1382_v17 = vadd.f32 1.0, %v3527_v8  ;;  %3252 = vmatprep.mubr.bf16.mxu1 %v1615_v29  ;;  %v1068_v19 = vmul.f32 %v3194_v14, %v4099_v42  ;;  %v948_v20 = vpop.f32.mrb[49].mxu0 }
 0x148   : > { %v3531_v27 = vpop.eup %3530  ;;  %3550 = vrcp.f32 %v1384_v11  ;;  %v1387_v61 = vadd.f32 1.0, %v3529_v49  ;;  %3253 = vmatmul.mubr.bf16.gmra.mrb[28].mxu1 %v1616_v13  ;;  %v1066_v24 = vmul.f32 %v4099_v42, %v948_v20  ;;  %v3195_v25 = vpop.f32.mrb[50].mxu0 }
 0x149   : > { %v3533_v52 = vpop.eup %3532  ;;  %3552 = vrcp.f32 %v1382_v17  ;;  %v4381_v28 = vadd.f32 %v4104_v44, %v1068_v19  ;;  %v1069_v54 = vmul.f32 %v3195_v25, %v4099_v42  ;;  %v951_v30 = vpop.f32.mrb[51].mxu0  ;;  %v1571_v35 = vmul.f32 %v3531_v27, %v4287_v58 }
 0x14a   : > { %v3535_v34 = vpop.eup %3534  ;;  %3554 = vrcp.f32 %v1387_v61  ;;  %v4386_v56 = vadd.f32 %v4104_v44, %v1066_v24  ;;  %v1067_v39 = vmul.f32 %v4099_v42, %v951_v30  ;;  %v1569_v45 = vmul.f32 %v3533_v52, %v4292_v26 }
 0x14b   : > { %v3537_v36 = vpop.eup %3536  ;;  %v1572_v40 = vmul.f32 %v3535_v34, %v4297_v3  ;;  %3556 = vpow2.f32 %v2952_v18  ;;  %v2958_v41 = vmul.f32 -1.442695, %v4381_v28  ;;  %v4392_v12 = vadd.f32 %v4104_v44, %v1069_v54  ;;  %v4413_v18 = vld [vmem:[%s4959_s3] ss:$0 sm:$0xff] }
 0x14c   : > { %v3539_v43 = vpop.eup %3538  ;;  %v1570_v58 = vmul.f32 %v3537_v36, %v4300_v9  ;;  %3558 = vpow2.f32 %v2955_v23  ;;  %v4397_v46 = vadd.f32 %v4104_v44, %v1067_v39  ;;  %v2956_v59 = vmul.f32 -1.442695, %v4386_v56 }
 0x14d   : > { %v3541_v47 = vpop.eup %3540  ;;  %v1385_v51 = vadd.f32 1.0, %v3539_v43  ;;  %3560 = vpow2.f32 %v2953_v55  ;;  %v1618_v53 = vpack.c.bf16 %v1572_v40, %v1571_v35  ;;  %v2959_v9 = vmul.f32 -1.442695, %v4392_v12 }
 0x14e   : > { %v3543_v3 = vpop.eup %3542  ;;  %v1388_v7 = vadd.f32 1.0, %v3541_v47  ;;  %3562 = vpow2.f32 %v2958_v41  ;;  %v1617_v60 = vpack.c.bf16 %v1570_v58, %v1569_v45  ;;  %v3198_v22 = vpop.f32.mrb[52].mxu0  ;;  %v2957_v5 = vmul.f32 -1.442695, %v4397_v46 }
 0x14f   : > { %v3545_v62 = vpop.eup %3544  ;;  %3564 = vrcp.f32 %v1385_v51  ;;  %v1386_v26 = vadd.f32 1.0, %v3543_v3  ;;  %v1072_v1 = vmul.f32 %v3198_v22, %v4099_v42  ;;  %v964_v63 = vpop.f32.mrb[53].mxu0 }
 0x150   : > { %v3547_v4 = vpop.eup %3546  ;;  %3566 = vrcp.f32 %v1388_v7  ;;  %v1391_v32 = vadd.f32 1.0, %v3545_v62  ;;  %3256 = vmatprep.mubr.bf16.mxu1 %v1617_v60  ;;  %v1070_v0 = vmul.f32 %v4099_v42, %v964_v63  ;;  %v3199_v6 = vpop.f32.mrb[54].mxu0 }
 0x151   : > { %v3549_v29 = vpop.eup %3548  ;;  %v1575_v8 = vmul.f32 %v3547_v4, %v4310_v57  ;;  %3568 = vrcp.f32 %v1386_v26  ;;  %3257 = vmatmul.mubr.bf16.gmra.mrb[32].mxu1 %v1618_v53  ;;  %v4406_v11 = vadd.f32 %v4104_v44, %v1072_v1  ;;  %v1073_v13 = vmul.f32 %v3199_v6, %v4099_v42  ;;  %v967_v14 = vpop.f32.mrb[55].mxu0  ;;  %v4421_v44 = vld [vmem:[%s4958_s2] ss:$0 sm:$0xff] }
 0x152   : > { %v3551_v49 = vpop.eup %3550  ;;  %v1573_v17 = vmul.f32 %v3549_v29, %v4315_v38  ;;  %3570 = vrcp.f32 %v1391_v32  ;;  %v4416_v19 = vadd.f32 %v4413_v18, %v1070_v0  ;;  %v1071_v42 = vmul.f32 %v4421_v44, %v967_v14 }
 0x153   : > { %v3553_v57 = vpop.eup %3552  ;;  %v1576_v20 = vmul.f32 %v3551_v49, %v4320_v31  ;;  %3572 = vpow2.f32 %v2956_v59  ;;  %v2962_v38 = vmul.f32 -1.442695, %v4406_v11  ;;  %v4427_v27 = vadd.f32 %v4413_v18, %v1073_v13 }
 0x154   : > { %v3555_v61 = vpop.eup %3554  ;;  %v1574_v23 = vmul.f32 %v3553_v57, %v4324_v15  ;;  %3574 = vpow2.f32 %v2959_v9  ;;  %v2960_v24 = vmul.f32 -1.442695, %v4416_v19  ;;  %v4432_v25 = vadd.f32 %v4413_v18, %v1071_v42 }
 0x155   : > { %v3557_v52 = vpop.eup %3556  ;;  %3576 = vpow2.f32 %v2957_v5  ;;  %v1620_v55 = vpack.c.bf16 %v1576_v20, %v1575_v8  ;;  %v4435_v31 = vmul.f32 %v3555_v61, %v4334_v10  ;;  %v2963_v15 = vmul.f32 -1.442695, %v4427_v27 }
 0x156   : > { %v3559_v54 = vpop.eup %3558  ;;  %v1389_v30 = vadd.f32 1.0, %v3557_v52  ;;  %3578 = vpow2.f32 %v2962_v38  ;;  %v1619_v34 = vpack.c.bf16 %v1574_v23, %v1573_v17  ;;  %v3202_v35 = vpop.f32.mrb[56].mxu0  ;;  %v2961_v58 = vmul.f32 -1.442695, %v4432_v25 }
 0x157   : > { %v3561_v39 = vpop.eup %3560  ;;  %v1392_v36 = vadd.f32 1.0, %v3559_v54  ;;  %3580 = vpow2.f32 %v2960_v24  ;;  %v1076_v40 = vmul.f32 %v4421_v44, %v3202_v35  ;;  %v980_v41 = vpop.f32.mrb[57].mxu0 }
 0x158   : > { %v3563_v43 = vpop.eup %3562  ;;  %3582 = vrcp.f32 %v1389_v30  ;;  %v1390_v45 = vadd.f32 1.0, %v3561_v39  ;;  %3260 = vmatprep.mubr.bf16.mxu1 %v1619_v34  ;;  %v1074_v10 = vmul.f32 %v4421_v44, %v980_v41  ;;  %v3203_v47 = vpop.f32.mrb[58].mxu0 }
 0x159   : > { %v3565_v51 = vpop.eup %3564  ;;  %3584 = vrcp.f32 %v1392_v36  ;;  %v1395_v53 = vadd.f32 1.0, %v3563_v43  ;;  %3261 = vmatmul.mubr.bf16.gmra.mrb[36].mxu1 %v1620_v55  ;;  %v4442_v3 = vadd.f32 %v4413_v18, %v1076_v40  ;;  %v1077_v7 = vmul.f32 %v4421_v44, %v3203_v47  ;;  %v983_v59 = vpop.f32.mrb[59].mxu0 }
 0x15a   : > { %v3567_v60 = vpop.eup %3566  ;;  %v1577_v22 = vmul.f32 %v3565_v51, %v4339_v16  ;;  %3586 = vrcp.f32 %v1390_v45  ;;  %v4447_v62 = vadd.f32 %v4413_v18, %v1074_v10  ;;  %v1075_v26 = vmul.f32 %v4421_v44, %v983_v59 }
 0x15b   : > { %v3569_v9 = vpop.eup %3568  ;;  %v1580_v1 = vmul.f32 %v3567_v60, %v4345_v21  ;;  %3588 = vrcp.f32 %v1395_v53  ;;  %v2966_v63 = vmul.f32 -1.442695, %v4442_v3  ;;  %v4453_v4 = vadd.f32 %v4413_v18, %v1077_v7 }
 0x15c   : > { %v3571_v32 = vpop.eup %3570  ;;  %v1578_v5 = vmul.f32 %v3569_v9, %v4349_v33  ;;  %3590 = vpow2.f32 %v2963_v15  ;;  %v2964_v16 = vmul.f32 -1.442695, %v4447_v62  ;;  %v4458_v0 = vadd.f32 %v4413_v18, %v1075_v26 }
 0x15d   : > { %v3573_v6 = vpop.eup %3572  ;;  %3592 = vpow2.f32 %v2961_v58  ;;  %v1622_v29 = vpack.c.bf16 %v1580_v1, %v4435_v31  ;;  %v2967_v33 = vmul.f32 -1.442695, %v4453_v4  ;;  %v1583_v43 = vmul.f32 %v3571_v32, %v4357_v50 }
 0x15e   : > { %v3575_v21 = vpop.eup %3574  ;;  %v1393_v8 = vadd.f32 1.0, %v3573_v6  ;;  %3594 = vpow2.f32 %v2966_v63  ;;  %v1621_v13 = vpack.c.bf16 %v1578_v5, %v1577_v22  ;;  %v3206_v14 = vpop.f32.mrb[60].mxu0  ;;  %v2965_v61 = vmul.f32 -1.442695, %v4458_v0 }
 0x15f   : > { %v3577_v49 = vpop.eup %3576  ;;  %v1396_v17 = vadd.f32 1.0, %v3575_v21  ;;  %3596 = vpow2.f32 %v2964_v16  ;;  %v1080_v42 = vmul.f32 %v4421_v44, %v3206_v14  ;;  %v996_v57 = vpop.f32.mrb[61].mxu0 }
 0x160   : > { %v3579_v20 = vpop.eup %3578  ;;  %3598 = vrcp.f32 %v1393_v8  ;;  %v1394_v38 = vadd.f32 1.0, %v3577_v49  ;;  %3264 = vmatprep.mubr.bf16.mxu1 %v1621_v13  ;;  %v1078_v23 = vmul.f32 %v4421_v44, %v996_v57  ;;  %v3207_v24 = vpop.f32.mrb[62].mxu0 }
 0x161   : > { %v3581_v52 = vpop.eup %3580  ;;  %3600 = vrcp.f32 %v1396_v17  ;;  %v1399_v55 = vadd.f32 1.0, %v3579_v20  ;;  %3265 = vmatmul.mubr.bf16.gmra.mrb[40].mxu1 %v1622_v29  ;;  %v4466_v54 = vadd.f32 %v4413_v18, %v1080_v42  ;;  %v1081_v31 = vmul.f32 %v4421_v44, %v3207_v24  ;;  %v999_v30 = vpop.f32.mrb[63].mxu0 }
 0x162   : > { %v3583_v34 = vpop.eup %3582  ;;  %3602 = vrcp.f32 %v1394_v38  ;;  %v1397_v35 = vadd.f32 1.0, %v3581_v52  ;;  %v4470_v39 = vadd.f32 %v4413_v18, %v1078_v23  ;;  %v1079_v36 = vmul.f32 %v4421_v44, %v999_v30 }
 0x163   : > { %v3585_v15 = vpop.eup %3584  ;;  %3604 = vrcp.f32 %v1399_v55  ;;  %v2970_v40 = vmul.f32 -1.442695, %v4466_v54  ;;  %v1581_v47 = vmul.f32 %v3583_v34, %v4366_v2  ;;  %v4480_v44 = vadd.f32 %v4413_v18, %v1081_v31 }
 0x164   : > { %v3587_v41 = vpop.eup %3586  ;;  %v1584_v45 = vmul.f32 %v3585_v15, %v4370_v48  ;;  %3606 = vrcp.f32 %v1397_v35  ;;  %v2968_v58 = vmul.f32 -1.442695, %v4470_v39  ;;  %v4483_v7 = vadd.f32 %v4413_v18, %v1079_v36 }
 0x165   : > { %v3589_v10 = vpop.eup %3588  ;;  %v1582_v51 = vmul.f32 %v3587_v41, %v4373_v37  ;;  %3608 = vpow2.f32 %v2967_v33  ;;  %v2971_v37 = vmul.f32 -1.442695, %v4480_v44 }
 0x166   : > { %v3591_v53 = vpop.eup %3590  ;;  %3610 = vpow2.f32 %v2965_v61  ;;  %v1624_v50 = vpack.c.bf16 %v1584_v45, %v1583_v43  ;;  %v2969_v1 = vmul.f32 -1.442695, %v4483_v7  ;;  %v1587_v32 = vmul.f32 %v3589_v10, %v4381_v28 }
 0x167   : > { %v3593_v59 = vpop.eup %3592  ;;  %v1400_v48 = vadd.f32 1.0, %v3591_v53  ;;  %3612 = vpow2.f32 %v2970_v40  ;;  %v1623_v60 = vpack.c.bf16 %v1582_v51, %v1581_v47 }
 0x168   : > { %v3595_v22 = vpop.eup %3594  ;;  %v1398_v26 = vadd.f32 1.0, %v3593_v59  ;;  %3614 = vpow2.f32 %v2968_v58 }
 0x169   : > { %v3597_v2 = vpop.eup %3596  ;;  %3616 = vrcp.f32 %v1400_v48  ;;  %3268 = vmatprep.mubr.bf16.mxu1 %v1623_v60  ;;  %v1403_v16 = vadd.f32 1.0, %v3595_v22  ;;  %v3924_v60 = vmov 0.0   ;;  %v4524_v22 = vld [vmem:[%s4962_s6] ss:$0 sm:$0xff] }
 0x16a   : > { %v3599_v9 = vpop.eup %3598  ;;  %3618 = vrcp.f32 %v1398_v26  ;;  %3269 = vmatmul.mubr.bf16.gmra.mrb[44].mxu1 %v1624_v50  ;;  %v1401_v8 = vadd.f32 1.0, %v3597_v2  ;;  %3288 = vmatprep.subr.bf16.mxu0 %v3924_v60 }
 0x16b   : > { %v3601_v18 = vpop.eup %3600  ;;  %v1585_v29 = vmul.f32 %v3599_v9, %v4386_v56  ;;  %3620 = vpow2.f32 %v2971_v37  ;;  %3304 = vmatprep.mubr.msk.bf16.mxu0 %vm3925_vm1, %v3924_v60 }
 0x16c   : > { %v3603_v63 = vpop.eup %3602  ;;  %v1588_v5 = vmul.f32 %v3601_v18, %v4392_v12  ;;  %3622 = vpow2.f32 %v2969_v1 }
 0x16d   : > { %v3605_v6 = vpop.eup %3604  ;;  %v1586_v21 = vmul.f32 %v3603_v63, %v4397_v46  ;;  %3624 = vrcp.f32 %v1403_v16 }
 0x16e   : > { %v3607_v13 = vpop.eup %3606  ;;  %v1626_v14 = vpack.c.bf16 %v1588_v5, %v1587_v32  ;;  %3626 = vrcp.f32 %v1401_v8  ;;  %v1591_v20 = vmul.f32 %v3605_v6, %v4406_v11 }
 0x16f   : > { %v3609_v49 = vpop.eup %3608  ;;  %v1625_v17 = vpack.c.bf16 %v1586_v21, %v1585_v29  ;;  %v1589_v23 = vmul.f32 %v3607_v13, %v4416_v19  ;;  %v3379_v29 = vld [vmem:[%s4963_s7 + $0x18] sm:$0xff]  }
 0x170   : > { %v3611_v33 = vpop.eup %3610  ;;  %v1404_v42 = vadd.f32 1.0, %v3609_v49 }
 0x171   : > { %v3613_v57 = vpop.eup %3612  ;;  %v1402_v28 = vadd.f32 1.0, %v3611_v33  ;;  %3272 = vmatprep.mubr.bf16.mxu1 %v1625_v17 }
 0x172   : > { %v3615_v12 = vpop.eup %3614  ;;  %3628 = vrcp.f32 %v1404_v42  ;;  %3273 = vmatmul.mubr.bf16.gmra.mrb[48].mxu1 %v1626_v14  ;;  %v1407_v61 = vadd.f32 1.0, %v3613_v57 }
 0x173   : > { %v3617_v56 = vpop.eup %3616  ;;  %3630 = vrcp.f32 %v1402_v28  ;;  %v1405_v52 = vadd.f32 1.0, %v3615_v12 }
 0x174   : > { %v3619_v46 = vpop.eup %3618  ;;  %v1592_v38 = vmul.f32 %v3617_v56, %v4427_v27  ;;  %3632 = vrcp.f32 %v1407_v61 }
 0x175   : > { %v1590_v24 = vmul.f32 %v3619_v46, %v4432_v25  ;;  %v3621_v31 = vpop.eup %3620  ;;  %3634 = vrcp.f32 %v1405_v52 }
 0x176   : > { %v1628_v55 = vpack.c.bf16 %v1592_v38, %v1591_v20  ;;  %v3623_v34 = vpop.eup %3622  ;;  %v1408_v35 = vadd.f32 1.0, %v3621_v31 }
 0x177   : > { %v1627_v30 = vpack.c.bf16 %v1590_v24, %v1589_v23  ;;  %v1406_v36 = vadd.f32 1.0, %v3623_v34  ;;  %v3625_v15 = vpop.eup %3624 }
 0x178   : > { %3636 = vrcp.f32 %v1408_v35  ;;  %v3627_v11 = vpop.eup %3626  ;;  %v1595_v19 = vmul.f32 %v3625_v15, %v4442_v3 }
 0x179   : > { %3276 = vmatprep.mubr.bf16.mxu1 %v1627_v30  ;;  %3638 = vrcp.f32 %v1406_v36  ;;  %v1593_v41 = vmul.f32 %v3627_v11, %v4447_v62 }
 0x17a   : > { %3277 = vmatmul.mubr.bf16.gmra.mrb[52].mxu1 %v1628_v55 }
 0x17c   : > { %v3629_v27 = vpop.eup %3628 }
 0x17d   : > { %v3631_v40 = vpop.eup %3630  ;;  %v1596_v25 = vmul.f32 %v3629_v27, %v4453_v4 }
 0x17e   : > { %v1594_v43 = vmul.f32 %v3631_v40, %v4458_v0  ;;  %v3633_v10 = vpop.eup %3632  ;;  %v3376_v0 = vld [vmem:[%s4963_s7] sm:$0xff]  }
 0x17f   : > { %v1630_v45 = vpack.c.bf16 %v1596_v25, %v1595_v19  ;;  %v3635_v47 = vpop.eup %3634  ;;  %v1599_v50 = vmul.f32 %v3633_v10, %v4466_v54  ;;  %3289 = vmatpush3.bf16.msra.mxu0 %v3376_v0  ;;  %v3377_v54 = vld [vmem:[%s4963_s7 + $0x8] sm:$0xff]  }
 0x180   : > { %v1629_v58 = vpack.c.bf16 %v1594_v43, %v1593_v41  ;;  %v1597_v3 = vmul.f32 %v3635_v47, %v4470_v39  ;;  %3290 = vmatprep.subr.bf16.mxu0 %v3924_v60  ;;  %v3378_v39 = vld [vmem:[%s4963_s7 + $0x10] sm:$0xff]  }
 0x182   : > { %3280 = vmatprep.mubr.bf16.mxu1 %v1629_v58  ;;  %v3637_v51 = vpop.eup %3636 }
 0x183   : > { %3281 = vmatmul.mubr.bf16.gmra.mrb[56].mxu1 %v1630_v45  ;;  %v3639_v53 = vpop.eup %3638  ;;  %v1600_v59 = vmul.f32 %v3637_v51, %v4480_v44  ;;  %3291 = vmatpush3.bf16.msra.mxu0 %v3377_v54  ;;  %v4519_v44 = vld [vmem:[%s4961_s5] ss:$0 sm:$0xff] }
 0x184   : > { %v1598_v4 = vmul.f32 %v3639_v53, %v4483_v7  ;;  %3292 = vmatprep.subr.bf16.mxu0 %v3924_v60 }
 0x185   : > { %v1632_v48 = vpack.c.bf16 %v1600_v59, %v1599_v50  ;;  %v3380_v59 = vld [vmem:[%s4963_s7 + $0x20] sm:$0xff]  }
 0x186   : > { %v1631_v62 = vpack.c.bf16 %v1598_v4, %v1597_v3 }
 0x187   : > { %3293 = vmatpush3.bf16.msra.mxu0 %v3378_v39 }
 0x188   : > { %3284 = vmatprep.mubr.bf16.mxu1 %v1631_v62  ;;  %3294 = vmatprep.subr.bf16.mxu0 %v3924_v60 }
 0x18b   : > { %3285 = vmatmul.mubr.bf16.gmra.mrb[60].mxu1 %v1632_v48  ;;  %3295 = vmatpush3.bf16.msra.mxu0 %v3379_v29 }
 0x18c   : > { %3296 = vmatprep.subr.bf16.mxu0 %v3924_v60 }
 0x18f   : > { %3297 = vmatpush3.bf16.msra.mxu0 %v3380_v59 }
 0x190   : > { %3298 = vmatprep.subr.bf16.mxu0 %v3924_v60 }
 0x1e2   : > { %v3226_v7 = vpop.f32.mrb[0].mxu1 }
 0x1e3   : > { %v1995_v26 = vmul.f32 %v3226_v7, %v4519_v44  ;;  %v1731_v2 = vpop.f32.mrb[1].mxu1 }
 0x1e4   : > { %v1993_v37 = vmul.f32 %v4519_v44, %v1731_v2  ;;  %v3227_v9 = vpop.f32.mrb[2].mxu1 }
 0x1e5   : > { %v4529_v1 = vadd.f32 %v4524_v22, %v1995_v26  ;;  %v1996_v18 = vmul.f32 %v3227_v9, %v4519_v44  ;;  %v1734_v63 = vpop.f32.mrb[3].mxu1 }
 0x1e6   : > { %v4533_v32 = vadd.f32 %v4524_v22, %v1993_v37  ;;  %v1994_v5 = vmul.f32 %v4519_v44, %v1734_v63 }
 0x1e7   : > { %v2984_v16 = vmul.f32 -1.442695, %v4529_v1  ;;  %v4538_v6 = vadd.f32 %v4524_v22, %v1996_v18 }
 0x1e8   : > { %v2982_v21 = vmul.f32 -1.442695, %v4533_v32  ;;  %v4545_v8 = vadd.f32 %v4524_v22, %v1994_v5 }
 0x1e9   : > { %3640 = vpow2.f32 %v2984_v16  ;;  %v2985_v13 = vmul.f32 -1.442695, %v4538_v6 }
 0x1ea   : > { %3642 = vpow2.f32 %v2982_v21  ;;  %v2983_v14 = vmul.f32 -1.442695, %v4545_v8 }
 0x1eb   : > { %3644 = vpow2.f32 %v2985_v13  ;;  %v3230_v49 = vpop.f32.mrb[4].mxu1 }
 0x1ec   : > { %3646 = vpow2.f32 %v2983_v14  ;;  %v1999_v17 = vmul.f32 %v3230_v49, %v4519_v44  ;;  %v1747_v33 = vpop.f32.mrb[5].mxu1 }
 0x1ed   : > { %v1997_v42 = vmul.f32 %v4519_v44, %v1747_v33  ;;  %v3231_v57 = vpop.f32.mrb[6].mxu1 }
 0x1ee   : > { %v4553_v28 = vadd.f32 %v4524_v22, %v1999_v17  ;;  %v2000_v12 = vmul.f32 %v3231_v57, %v4519_v44  ;;  %v1750_v56 = vpop.f32.mrb[7].mxu1 }
 0x1ef   : > { %v4557_v46 = vadd.f32 %v4524_v22, %v1997_v42  ;;  %v1998_v20 = vmul.f32 %v4519_v44, %v1750_v56 }
 0x1f0   : > { %v2988_v38 = vmul.f32 -1.442695, %v4553_v28  ;;  %v4562_v61 = vadd.f32 %v4524_v22, %v2000_v12 }
 0x1f1   : > { %v2986_v23 = vmul.f32 -1.442695, %v4557_v46  ;;  %v4566_v24 = vadd.f32 %v4524_v22, %v1998_v20 }
 0x1f2   : > { %3648 = vpow2.f32 %v2988_v38  ;;  %v2989_v52 = vmul.f32 -1.442695, %v4562_v61 }
 0x1f3   : > { %v3641_v55 = vpop.eup %3640  ;;  %3650 = vpow2.f32 %v2986_v23  ;;  %v2987_v31 = vmul.f32 -1.442695, %v4566_v24  ;;  %v3234_v30 = vpop.f32.mrb[8].mxu1 }
 0x1f4   : > { %v3643_v34 = vpop.eup %3642  ;;  %v2322_v35 = vadd.f32 1.0, %v3641_v55  ;;  %3652 = vpow2.f32 %v2989_v52  ;;  %v2003_v36 = vmul.f32 %v3234_v30, %v4519_v44  ;;  %v1763_v15 = vpop.f32.mrb[9].mxu1 }
 0x1f5   : > { %v3645_v11 = vpop.eup %3644  ;;  %v2320_v27 = vadd.f32 1.0, %v3643_v34  ;;  %3654 = vpow2.f32 %v2987_v31  ;;  %v2001_v40 = vmul.f32 %v4519_v44, %v1763_v15  ;;  %v3235_v19 = vpop.f32.mrb[10].mxu1 }
 0x1f6   : > { %v3647_v25 = vpop.eup %3646  ;;  %3656 = vrcp.f32 %v2322_v35  ;;  %v2323_v41 = vadd.f32 1.0, %v3645_v11  ;;  %v4573_v43 = vadd.f32 %v4524_v22, %v2003_v36  ;;  %v2004_v45 = vmul.f32 %v3235_v19, %v4519_v44  ;;  %v1766_v58 = vpop.f32.mrb[11].mxu1 }
 0x1f7   : > { %3658 = vrcp.f32 %v2320_v27  ;;  %v2321_v10 = vadd.f32 1.0, %v3647_v25  ;;  %v4577_v47 = vadd.f32 %v4524_v22, %v2001_v40  ;;  %v2002_v51 = vmul.f32 %v4519_v44, %v1766_v58 }
 0x1f8   : > { %3660 = vrcp.f32 %v2323_v41  ;;  %v2992_v53 = vmul.f32 -1.442695, %v4573_v43  ;;  %v4582_v50 = vadd.f32 %v4524_v22, %v2004_v45 }
 0x1f9   : > { %3662 = vrcp.f32 %v2321_v10  ;;  %v2990_v3 = vmul.f32 -1.442695, %v4577_v47  ;;  %v4589_v4 = vadd.f32 %v4524_v22, %v2002_v51 }
 0x1fa   : > { %3664 = vpow2.f32 %v2992_v53  ;;  %v2993_v48 = vmul.f32 -1.442695, %v4582_v50 }
 0x1fb   : > { %3666 = vpow2.f32 %v2990_v3  ;;  %v2991_v62 = vmul.f32 -1.442695, %v4589_v4  ;;  %v3238_v0 = vpop.f32.mrb[12].mxu1 }
 0x1fc   : > { %v3649_v54 = vpop.eup %3648  ;;  %3668 = vpow2.f32 %v2993_v48  ;;  %v2007_v39 = vmul.f32 %v3238_v0, %v4519_v44  ;;  %v1779_v7 = vpop.f32.mrb[13].mxu1 }
 0x1fd   : > { %v3651_v26 = vpop.eup %3650  ;;  %v2326_v2 = vadd.f32 1.0, %v3649_v54  ;;  %3670 = vpow2.f32 %v2991_v62  ;;  %v2005_v37 = vmul.f32 %v4519_v44, %v1779_v7  ;;  %v3239_v9 = vpop.f32.mrb[14].mxu1 }
 0x1fe   : > { %v3653_v18 = vpop.eup %3652  ;;  %v2324_v63 = vadd.f32 1.0, %v3651_v26  ;;  %v4597_v5 = vadd.f32 %v4524_v22, %v2007_v39  ;;  %v2008_v16 = vmul.f32 %v3239_v9, %v4519_v44  ;;  %v1782_v29 = vpop.f32.mrb[15].mxu1 }
 0x1ff   : > { %v3655_v21 = vpop.eup %3654  ;;  %3672 = vrcp.f32 %v2326_v2  ;;  %v2327_v13 = vadd.f32 1.0, %v3653_v18  ;;  %v4601_v14 = vadd.f32 %v4524_v22, %v2005_v37  ;;  %v2006_v49 = vmul.f32 %v4519_v44, %v1782_v29 }
 0x200   : > { %v3657_v17 = vpop.eup %3656  ;;  %3674 = vrcp.f32 %v2324_v63  ;;  %v2325_v33 = vadd.f32 1.0, %v3655_v21  ;;  %v2996_v42 = vmul.f32 -1.442695, %v4597_v5  ;;  %v4606_v57 = vadd.f32 %v4524_v22, %v2008_v16 }
 0x201   : > { %v3659_v12 = vpop.eup %3658  ;;  %3676 = vrcp.f32 %v2327_v13  ;;  %v2994_v56 = vmul.f32 -1.442695, %v4601_v14  ;;  %v4610_v20 = vadd.f32 %v4524_v22, %v2006_v49  ;;  %v2514_v55 = vmul.f32 %v3657_v17, %v4529_v1 }
 0x202   : > { %v3661_v38 = vpop.eup %3660  ;;  %3678 = vrcp.f32 %v2325_v33  ;;  %v2997_v23 = vmul.f32 -1.442695, %v4606_v57  ;;  %v2512_v35 = vmul.f32 %v3659_v12, %v4533_v32 }
 0x203   : > { %v3663_v52 = vpop.eup %3662  ;;  %3680 = vpow2.f32 %v2996_v42  ;;  %v2995_v31 = vmul.f32 -1.442695, %v4610_v20  ;;  %v3242_v30 = vpop.f32.mrb[16].mxu1  ;;  %v2515_v40 = vmul.f32 %v3661_v38, %v4538_v6 }
 0x204   : > { %v3665_v34 = vpop.eup %3664  ;;  %v2513_v36 = vmul.f32 %v3663_v52, %v4545_v8  ;;  %3682 = vpow2.f32 %v2994_v56  ;;  %v2011_v15 = vmul.f32 %v3242_v30, %v4519_v44  ;;  %v1795_v11 = vpop.f32.mrb[17].mxu1  ;;  %v3381_v56 = vld [vmem:[%s4963_s7 + $0x28] sm:$0xff]  }
 0x205   : > { %v3667_v27 = vpop.eup %3666  ;;  %v2330_v19 = vadd.f32 1.0, %v3665_v34  ;;  %3684 = vpow2.f32 %v2997_v23  ;;  %v2009_v1 = vmul.f32 %v4519_v44, %v1795_v11  ;;  %v3243_v25 = vpop.f32.mrb[18].mxu1  ;;  %3299 = vmatpush3.bf16.msra.mxu0 %v3381_v56 }
 0x206   : > { %v3669_v41 = vpop.eup %3668  ;;  %v2577_v45 = vadd.f32 %v2513_v36, %v2512_v35  ;;  %v2328_v58 = vadd.f32 1.0, %v3667_v27  ;;  %3686 = vpow2.f32 %v2995_v31  ;;  %v4621_v32 = vadd.f32 %v4524_v22, %v2011_v15  ;;  %v1798_v8 = vpop.f32.mrb[19].mxu1  ;;  %3300 = vmatprep.subr.bf16.mxu0 %v3924_v60  ;;  %v3382_v27 = vld [vmem:[%s4963_s7 + $0x30] sm:$0xff]  }
 0x207   : > { %v3671_v10 = vpop.eup %3670  ;;  %3688 = vrcp.f32 %v2330_v19  ;;  %v2331_v51 = vadd.f32 1.0, %v3669_v41  ;;  %v4624_v53 = vadd.f32 %v4524_v22, %v2009_v1  ;;  %v2012_v6 = vmul.f32 %v3243_v25, %v4519_v44 }
 0x208   : > { %v2578_v59 = vadd.f32 %v2577_v45, %v2514_v55  ;;  %3690 = vrcp.f32 %v2328_v58  ;;  %v2329_v3 = vadd.f32 1.0, %v3671_v10  ;;  %v3000_v48 = vmul.f32 -1.442695, %v4621_v32 }
 0x209   : > { %v3673_v62 = vpop.eup %3672  ;;  %3692 = vrcp.f32 %v2331_v51  ;;  %v2998_v0 = vmul.f32 -1.442695, %v4624_v53  ;;  %v4630_v54 = vadd.f32 %v4524_v22, %v2012_v6  ;;  %v2010_v39 = vmul.f32 %v4519_v44, %v1798_v8  ;;  %3301 = vmatpush3.bf16.msra.mxu0 %v3382_v27 }
 0x20a   : > { %v3675_v7 = vpop.eup %3674  ;;  %v2579_v26 = vadd.f32 %v2578_v59, %v2515_v40  ;;  %3694 = vrcp.f32 %v2329_v3  ;;  %v2518_v29 = vmul.f32 %v3673_v62, %v4553_v28  ;;  %3302 = vmatprep.subr.bf16.mxu0 %v3924_v60 }
 0x20b   : > { %v3677_v2 = vpop.eup %3676  ;;  %v2516_v37 = vmul.f32 %v3675_v7, %v4557_v46  ;;  %3696 = vpow2.f32 %v3000_v48  ;;  %v3001_v9 = vmul.f32 -1.442695, %v4630_v54  ;;  %v4636_v18 = vadd.f32 %v4524_v22, %v2010_v39  ;;  %v3246_v63 = vpop.f32.mrb[20].mxu1  ;;  %v3383_v48 = vld [vmem:[%s4963_s7 + $0x38] sm:$0xff]  }
 0x20c   : > { %v3679_v16 = vpop.eup %3678  ;;  %v2519_v21 = vmul.f32 %v3677_v2, %v4562_v61  ;;  %3698 = vpow2.f32 %v2998_v0  ;;  %v2015_v13 = vmul.f32 %v3246_v63, %v4519_v44  ;;  %v1811_v49 = vpop.f32.mrb[21].mxu1 }
 0x20d   : > { %v3681_v17 = vpop.eup %3680  ;;  %v2580_v33 = vadd.f32 %v2579_v26, %v2516_v37  ;;  %v2517_v46 = vmul.f32 %v3679_v16, %v4566_v24  ;;  %3700 = vpow2.f32 %v3001_v9  ;;  %v2999_v42 = vmul.f32 -1.442695, %v4636_v18  ;;  %v3247_v12 = vpop.f32.mrb[22].mxu1  ;;  %3303 = vmatpush3.bf16.msra.mxu0 %v3383_v48 }
 0x20e   : > { %v3683_v38 = vpop.eup %3682  ;;  %v2334_v28 = vadd.f32 1.0, %v3681_v17  ;;  %v4647_v61 = vadd.f32 %v4524_v22, %v2015_v13  ;;  %v2013_v23 = vmul.f32 %v4519_v44, %v1811_v49  ;;  %v2016_v52 = vmul.f32 %v3247_v12, %v4519_v44  ;;  %v1814_v55 = vpop.f32.mrb[23].mxu1 }
 0x20f   : > { %v3685_v31 = vpop.eup %3684  ;;  %v2581_v24 = vadd.f32 %v2580_v33, %v2517_v46  ;;  %v2332_v30 = vadd.f32 1.0, %v3683_v38  ;;  %3702 = vpow2.f32 %v2999_v42  ;;  %v2014_v34 = vmul.f32 %v4519_v44, %v1814_v55 }
 0x210   : > { %v3687_v35 = vpop.eup %3686  ;;  %3704 = vrcp.f32 %v2334_v28  ;;  %v2335_v36 = vadd.f32 1.0, %v3685_v31  ;;  %v3004_v15 = vmul.f32 -1.442695, %v4647_v61  ;;  %v4654_v11 = vadd.f32 %v4524_v22, %v2013_v23 }
 0x211   : > { %v3689_v40 = vpop.eup %3688  ;;  %v2582_v19 = vadd.f32 %v2581_v24, %v2518_v29  ;;  %3706 = vrcp.f32 %v2332_v30  ;;  %v2333_v1 = vadd.f32 1.0, %v3687_v35  ;;  %v4661_v25 = vadd.f32 %v4524_v22, %v2016_v52 }
 0x212   : > { %v3691_v41 = vpop.eup %3690  ;;  %v2522_v45 = vmul.f32 %v3689_v40, %v4573_v43  ;;  %3708 = vrcp.f32 %v2335_v36  ;;  %v3002_v58 = vmul.f32 -1.442695, %v4654_v11  ;;  %v4666_v8 = vadd.f32 %v4524_v22, %v2014_v34 }
 0x213   : > { %v3693_v10 = vpop.eup %3692  ;;  %v2520_v51 = vmul.f32 %v3691_v41, %v4577_v47  ;;  %v2583_v6 = vadd.f32 %v2582_v19, %v2519_v21  ;;  %3710 = vrcp.f32 %v2333_v1  ;;  %v3005_v59 = vmul.f32 -1.442695, %v4661_v25  ;;  %v3250_v3 = vpop.f32.mrb[24].mxu1 }
 0x214   : > { %v3695_v43 = vpop.eup %3694  ;;  %v2523_v62 = vmul.f32 %v3693_v10, %v4582_v50  ;;  %3712 = vpow2.f32 %v3004_v15  ;;  %v3003_v0 = vmul.f32 -1.442695, %v4666_v8  ;;  %v2019_v39 = vmul.f32 %v3250_v3, %v4519_v44  ;;  %v1827_v7 = vpop.f32.mrb[25].mxu1 }
 0x215   : > { %v3697_v47 = vpop.eup %3696  ;;  %v2584_v26 = vadd.f32 %v2583_v6, %v2520_v51  ;;  %v2521_v2 = vmul.f32 %v3695_v43, %v4589_v4  ;;  %3714 = vpow2.f32 %v3002_v58  ;;  %v2017_v37 = vmul.f32 %v4519_v44, %v1827_v7  ;;  %v3251_v9 = vpop.f32.mrb[26].mxu1 }
 0x216   : > { %v3699_v63 = vpop.eup %3698  ;;  %v2338_v16 = vadd.f32 1.0, %v3697_v47  ;;  %3716 = vpow2.f32 %v3005_v59  ;;  %v4680_v50 = vadd.f32 %v4524_v22, %v2019_v39  ;;  %v2020_v29 = vmul.f32 %v3251_v9, %v4519_v44  ;;  %v1830_v21 = vpop.f32.mrb[27].mxu1 }
 0x217   : > { %v3701_v13 = vpop.eup %3700  ;;  %v2585_v49 = vadd.f32 %v2584_v26, %v2521_v2  ;;  %v2336_v17 = vadd.f32 1.0, %v3699_v63  ;;  %3718 = vpow2.f32 %v3003_v0  ;;  %v4684_v33 = vadd.f32 %v4524_v22, %v2017_v37 }
 0x218   : > { %3720 = vrcp.f32 %v2338_v16  ;;  %v2339_v4 = vadd.f32 1.0, %v3701_v13  ;;  %v3008_v46 = vmul.f32 -1.442695, %v4680_v50  ;;  %v4688_v42 = vadd.f32 %v4524_v22, %v2020_v29 }
 0x219   : > { %v3703_v12 = vpop.eup %3702  ;;  %v2586_v56 = vadd.f32 %v2585_v49, %v2522_v45  ;;  %3722 = vrcp.f32 %v2336_v17  ;;  %v3006_v38 = vmul.f32 -1.442695, %v4684_v33  ;;  %v2018_v28 = vmul.f32 %v4519_v44, %v1830_v21 }
 0x21a   : > { %v3705_v23 = vpop.eup %3704  ;;  %3724 = vrcp.f32 %v2339_v4  ;;  %v2337_v52 = vadd.f32 1.0, %v3703_v12  ;;  %v3009_v55 = vmul.f32 -1.442695, %v4688_v42 }
 0x21b   : > { %v3707_v31 = vpop.eup %3706  ;;  %v2587_v24 = vadd.f32 %v2586_v56, %v2523_v62  ;;  %3726 = vpow2.f32 %v3008_v46  ;;  %v4694_v30 = vadd.f32 %v4524_v22, %v2018_v28  ;;  %v3254_v34 = vpop.f32.mrb[28].mxu1  ;;  %v2526_v36 = vmul.f32 %v3705_v23, %v4597_v5 }
 0x21c   : > { %v3709_v35 = vpop.eup %3708  ;;  %v2524_v15 = vmul.f32 %v3707_v31, %v4601_v14  ;;  %3728 = vrcp.f32 %v2337_v52  ;;  %v2023_v27 = vmul.f32 %v3254_v34, %v4519_v44  ;;  %v1843_v40 = vpop.f32.mrb[29].mxu1 }
 0x21d   : > { %v3711_v19 = vpop.eup %3710  ;;  %v2527_v1 = vmul.f32 %v3709_v35, %v4606_v57  ;;  %3730 = vpow2.f32 %v3006_v38  ;;  %v3007_v41 = vmul.f32 -1.442695, %v4694_v30  ;;  %v2021_v45 = vmul.f32 %v4519_v44, %v1843_v40  ;;  %v3255_v58 = vpop.f32.mrb[30].mxu1 }
 0x21e   : > { %v3713_v10 = vpop.eup %3712  ;;  %v2588_v60 = vadd.f32 %v2587_v24, %v2524_v15  ;;  %v2525_v51 = vmul.f32 %v3711_v19, %v4610_v20  ;;  %3732 = vpow2.f32 %v3009_v55  ;;  %v4705_v5 = vadd.f32 %v4524_v22, %v2023_v27  ;;  %v1846_v14 = vpop.f32.mrb[31].mxu1 }
 0x21f   : > { %v3715_v6 = vpop.eup %3714  ;;  %v2342_v59 = vadd.f32 1.0, %v3713_v10  ;;  %3734 = vpow2.f32 %v3007_v41  ;;  %v4708_v57 = vadd.f32 %v4524_v22, %v2021_v45  ;;  %v2024_v3 = vmul.f32 %v3255_v58, %v4519_v44 }
 0x220   : > { %v3717_v48 = vpop.eup %3716  ;;  %v2589_v43 = vadd.f32 %v2588_v60, %v2525_v51  ;;  %v2340_v62 = vadd.f32 1.0, %v3715_v6  ;;  %v3012_v0 = vmul.f32 -1.442695, %v4705_v5  ;;  %v2022_v20 = vmul.f32 %v4519_v44, %v1846_v14 }
 0x221   : > { %v3719_v39 = vpop.eup %3718  ;;  %3736 = vrcp.f32 %v2342_v59  ;;  %v2343_v7 = vadd.f32 1.0, %v3717_v48  ;;  %v3010_v47 = vmul.f32 -1.442695, %v4708_v57  ;;  %v4715_v26 = vadd.f32 %v4524_v22, %v2024_v3 }
 0x222   : > { %v3721_v2 = vpop.eup %3720  ;;  %v2590_v37 = vadd.f32 %v2589_v43, %v2526_v36  ;;  %3738 = vrcp.f32 %v2340_v62  ;;  %v2341_v9 = vadd.f32 1.0, %v3719_v39  ;;  %v4718_v63 = vadd.f32 %v4524_v22, %v2022_v20 }
 0x223   : > { %v3723_v16 = vpop.eup %3722  ;;  %3740 = vrcp.f32 %v2343_v7  ;;  %v3013_v29 = vmul.f32 -1.442695, %v4715_v26  ;;  %v2530_v46 = vmul.f32 %v3721_v2, %v4621_v32 }
 0x224   : > { %v3725_v21 = vpop.eup %3724  ;;  %v2528_v13 = vmul.f32 %v3723_v16, %v4624_v53  ;;  %v2591_v49 = vadd.f32 %v2590_v37, %v2527_v1  ;;  %3742 = vrcp.f32 %v2341_v9  ;;  %v3258_v17 = vpop.f32.mrb[32].mxu1  ;;  %v3011_v12 = vmul.f32 -1.442695, %v4718_v63 }
 0x225   : > { %v3727_v4 = vpop.eup %3726  ;;  %3744 = vpow2.f32 %v3012_v0  ;;  %v2027_v56 = vmul.f32 %v3258_v17, %v4519_v44  ;;  %v1859_v38 = vpop.f32.mrb[33].mxu1  ;;  %v2531_v51 = vmul.f32 %v3725_v21, %v4630_v54 }
 0x226   : > { %v3729_v28 = vpop.eup %3728  ;;  %v2592_v23 = vadd.f32 %v2591_v49, %v2528_v13  ;;  %v2346_v52 = vadd.f32 1.0, %v3727_v4  ;;  %3746 = vpow2.f32 %v3010_v47  ;;  %v2025_v55 = vmul.f32 %v4519_v44, %v1859_v38  ;;  %v3259_v31 = vpop.f32.mrb[34].mxu1 }
 0x227   : > { %v3731_v53 = vpop.eup %3730  ;;  %v2529_v24 = vmul.f32 %v3729_v28, %v4636_v18  ;;  %3748 = vpow2.f32 %v3013_v29  ;;  %v4728_v34 = vadd.f32 %v4524_v22, %v2027_v56  ;;  %v2028_v32 = vmul.f32 %v3259_v31, %v4519_v44  ;;  %v1862_v35 = vpop.f32.mrb[35].mxu1 }
 0x228   : > { %v3733_v36 = vpop.eup %3732  ;;  %3750 = vrcp.f32 %v2346_v52  ;;  %v2344_v15 = vadd.f32 1.0, %v3731_v53  ;;  %v4732_v27 = vadd.f32 %v4524_v22, %v2025_v55  ;;  %v2026_v40 = vmul.f32 %v4519_v44, %v1862_v35 }
 0x229   : > { %v3735_v19 = vpop.eup %3734  ;;  %v2593_v1 = vadd.f32 %v2592_v23, %v2529_v24  ;;  %v2347_v41 = vadd.f32 1.0, %v3733_v36  ;;  %3752 = vpow2.f32 %v3011_v12  ;;  %v3016_v18 = vmul.f32 -1.442695, %v4728_v34 }
 0x22a   : > { %3754 = vrcp.f32 %v2344_v15  ;;  %v2345_v45 = vadd.f32 1.0, %v3735_v19  ;;  %v3014_v58 = vmul.f32 -1.442695, %v4732_v27  ;;  %v4738_v10 = vadd.f32 %v4524_v22, %v2028_v32 }
 0x22b   : > { %v3737_v60 = vpop.eup %3736  ;;  %v2594_v14 = vadd.f32 %v2593_v1, %v2530_v46  ;;  %3756 = vrcp.f32 %v2347_v41  ;;  %v4742_v6 = vadd.f32 %v4524_v22, %v2026_v40 }
 0x22c   : > { %v3739_v59 = vpop.eup %3738  ;;  %3758 = vrcp.f32 %v2345_v45  ;;  %v3017_v3 = vmul.f32 -1.442695, %v4738_v10  ;;  %v3262_v48 = vpop.f32.mrb[36].mxu1  ;;  %v2534_v54 = vmul.f32 %v3737_v60, %v4647_v61 }
 0x22d   : > { %v3741_v43 = vpop.eup %3740  ;;  %v2532_v62 = vmul.f32 %v3739_v59, %v4654_v11  ;;  %v2595_v0 = vadd.f32 %v2594_v14, %v2531_v51  ;;  %3760 = vpow2.f32 %v3016_v18  ;;  %v3015_v20 = vmul.f32 -1.442695, %v4742_v6  ;;  %v1875_v39 = vpop.f32.mrb[37].mxu1 }
 0x22e   : > { %v3743_v7 = vpop.eup %3742  ;;  %3762 = vpow2.f32 %v3014_v58  ;;  %v2031_v47 = vmul.f32 %v3262_v48, %v4519_v44  ;;  %v2029_v2 = vmul.f32 %v4519_v44, %v1875_v39  ;;  %v3263_v37 = vpop.f32.mrb[38].mxu1  ;;  %v2535_v28 = vmul.f32 %v3741_v43, %v4661_v25 }
 0x22f   : > { %v3745_v9 = vpop.eup %3744  ;;  %v2596_v16 = vadd.f32 %v2595_v0, %v2532_v62  ;;  %v2533_v29 = vmul.f32 %v3743_v7, %v4666_v8  ;;  %3764 = vpow2.f32 %v3017_v3  ;;  %v2032_v11 = vmul.f32 %v3263_v37, %v4519_v44  ;;  %v1878_v21 = vpop.f32.mrb[39].mxu1 }
 0x230   : > { %v3747_v13 = vpop.eup %3746  ;;  %v2350_v49 = vadd.f32 1.0, %v3745_v9  ;;  %3766 = vpow2.f32 %v3015_v20  ;;  %v4753_v17 = vadd.f32 %v4524_v22, %v2031_v47  ;;  %v4756_v61 = vadd.f32 %v4524_v22, %v2029_v2 }
 0x231   : > { %v3749_v4 = vpop.eup %3748  ;;  %v2597_v46 = vadd.f32 %v2596_v16, %v2533_v29  ;;  %v2348_v12 = vadd.f32 1.0, %v3747_v13  ;;  %v4759_v56 = vadd.f32 %v4524_v22, %v2032_v11  ;;  %v2030_v8 = vmul.f32 %v4519_v44, %v1878_v21 }
 0x232   : > { %v3751_v38 = vpop.eup %3750  ;;  %3768 = vrcp.f32 %v2350_v49  ;;  %v2351_v23 = vadd.f32 1.0, %v3749_v4  ;;  %v3020_v52 = vmul.f32 -1.442695, %v4753_v17  ;;  %v3018_v24 = vmul.f32 -1.442695, %v4756_v61 }
 0x233   : > { %v3753_v55 = vpop.eup %3752  ;;  %v2598_v31 = vadd.f32 %v2597_v46, %v2534_v54  ;;  %v2538_v53 = vmul.f32 %v3751_v38, %v4680_v50  ;;  %3770 = vrcp.f32 %v2348_v12  ;;  %v3021_v36 = vmul.f32 -1.442695, %v4759_v56 }
 0x234   : > { %v3755_v32 = vpop.eup %3754  ;;  %3772 = vrcp.f32 %v2351_v23  ;;  %v2349_v35 = vadd.f32 1.0, %v3753_v55  ;;  %v4768_v15 = vadd.f32 %v4524_v22, %v2030_v8  ;;  %v3266_v25 = vpop.f32.mrb[40].mxu1 }
 0x235   : > { %v3757_v40 = vpop.eup %3756  ;;  %v2536_v19 = vmul.f32 %v3755_v32, %v4684_v33  ;;  %v2599_v1 = vadd.f32 %v2598_v31, %v2535_v28  ;;  %3774 = vpow2.f32 %v3020_v52  ;;  %v2035_v41 = vmul.f32 %v3266_v25, %v4519_v44  ;;  %v1891_v50 = vpop.f32.mrb[41].mxu1 }
 0x236   : > { %v3759_v18 = vpop.eup %3758  ;;  %v2539_v45 = vmul.f32 %v3757_v40, %v4688_v42  ;;  %3776 = vrcp.f32 %v2349_v35  ;;  %v3019_v58 = vmul.f32 -1.442695, %v4768_v15  ;;  %v2033_v60 = vmul.f32 %v4519_v44, %v1891_v50  ;;  %v3267_v51 = vpop.f32.mrb[42].mxu1 }
 0x237   : > { %v3761_v14 = vpop.eup %3760  ;;  %v2600_v59 = vadd.f32 %v2599_v1, %v2536_v19  ;;  %v2537_v3 = vmul.f32 %v3759_v18, %v4694_v30  ;;  %3778 = vpow2.f32 %v3018_v24  ;;  %v4777_v33 = vadd.f32 %v4524_v22, %v2035_v41  ;;  %v1894_v48 = vpop.f32.mrb[43].mxu1 }
 0x238   : > { %v3763_v43 = vpop.eup %3762  ;;  %v2354_v62 = vadd.f32 1.0, %v3761_v14  ;;  %3780 = vpow2.f32 %v3021_v36  ;;  %v4780_v42 = vadd.f32 %v4524_v22, %v2033_v60  ;;  %v2036_v0 = vmul.f32 %v3267_v51, %v4519_v44 }
 0x239   : > { %v3765_v20 = vpop.eup %3764  ;;  %v2601_v39 = vadd.f32 %v2600_v59, %v2537_v3  ;;  %v2352_v7 = vadd.f32 1.0, %v3763_v43  ;;  %3782 = vpow2.f32 %v3019_v58  ;;  %v3024_v54 = vmul.f32 -1.442695, %v4777_v33 }
 0x23a   : > { %v3767_v30 = vpop.eup %3766  ;;  %3784 = vrcp.f32 %v2354_v62  ;;  %v2355_v47 = vadd.f32 1.0, %v3765_v20  ;;  %v3022_v2 = vmul.f32 -1.442695, %v4780_v42  ;;  %v4786_v37 = vadd.f32 %v4524_v22, %v2036_v0 }
 0x23b   : > { %v2602_v9 = vadd.f32 %v2601_v39, %v2538_v53  ;;  %3786 = vrcp.f32 %v2352_v7  ;;  %v2353_v16 = vadd.f32 1.0, %v3767_v30  ;;  %v2034_v29 = vmul.f32 %v4519_v44, %v1894_v48 }
 0x23c   : > { %v3769_v11 = vpop.eup %3768  ;;  %3788 = vrcp.f32 %v2355_v47  ;;  %v3025_v21 = vmul.f32 -1.442695, %v4786_v37 }
 0x23d   : > { %v3771_v13 = vpop.eup %3770  ;;  %v2603_v49 = vadd.f32 %v2602_v9, %v2539_v45  ;;  %3790 = vrcp.f32 %v2353_v16  ;;  %v4791_v4 = vadd.f32 %v4524_v22, %v2034_v29  ;;  %v3270_v46 = vpop.f32.mrb[44].mxu1  ;;  %v2542_v41 = vmul.f32 %v3769_v11, %v4705_v5 }
 0x23e   : > { %v3773_v12 = vpop.eup %3772  ;;  %v2540_v8 = vmul.f32 %v3771_v13, %v4708_v57  ;;  %3792 = vpow2.f32 %v3024_v54  ;;  %v2039_v38 = vmul.f32 %v3270_v46, %v4519_v44  ;;  %v1907_v28 = vpop.f32.mrb[45].mxu1 }
 0x23f   : > { %v3775_v23 = vpop.eup %3774  ;;  %3794 = vpow2.f32 %v3022_v2  ;;  %v3023_v52 = vmul.f32 -1.442695, %v4791_v4  ;;  %v2037_v55 = vmul.f32 %v4519_v44, %v1907_v28  ;;  %v3271_v31 = vpop.f32.mrb[46].mxu1  ;;  %v2543_v43 = vmul.f32 %v3773_v12, %v4715_v26 }
 0x240   : > { %v3777_v53 = vpop.eup %3776  ;;  %v2604_v24 = vadd.f32 %v2603_v49, %v2540_v8  ;;  %v2358_v32 = vadd.f32 1.0, %v3775_v23  ;;  %3796 = vpow2.f32 %v3025_v21  ;;  %v4798_v35 = vadd.f32 %v4524_v22, %v2039_v38  ;;  %v1910_v36 = vpop.f32.mrb[47].mxu1 }
 0x241   : > { %v3779_v57 = vpop.eup %3778  ;;  %v2541_v25 = vmul.f32 %v3777_v53, %v4718_v63  ;;  %3798 = vpow2.f32 %v3023_v52  ;;  %v4802_v40 = vadd.f32 %v4524_v22, %v2037_v55  ;;  %v2040_v19 = vmul.f32 %v3271_v31, %v4519_v44 }
 0x242   : > { %v3781_v1 = vpop.eup %3780  ;;  %3800 = vrcp.f32 %v2358_v32  ;;  %v2356_v50 = vadd.f32 1.0, %v3779_v57  ;;  %v2038_v18 = vmul.f32 %v4519_v44, %v1910_v36  ;;  %v3028_v51 = vmul.f32 -1.442695, %v4798_v35 }
 0x243   : > { %v3783_v45 = vpop.eup %3782  ;;  %v2605_v58 = vadd.f32 %v2604_v24, %v2541_v25  ;;  %v2359_v60 = vadd.f32 1.0, %v3781_v1  ;;  %v4809_v63 = vadd.f32 %v4524_v22, %v2040_v19  ;;  %v3026_v3 = vmul.f32 -1.442695, %v4802_v40 }
 0x244   : > { %v3785_v14 = vpop.eup %3784  ;;  %3802 = vrcp.f32 %v2356_v50  ;;  %v2357_v59 = vadd.f32 1.0, %v3783_v45  ;;  %v4813_v48 = vadd.f32 %v4524_v22, %v2038_v18  ;;  %v4844_v18 = vld [vmem:[%s4961_s5] ss:$0 sm:$0xff] }
 0x245   : > { %v3787_v5 = vpop.eup %3786  ;;  %v2606_v62 = vadd.f32 %v2605_v58, %v2542_v41  ;;  %3804 = vrcp.f32 %v2359_v60  ;;  %v3029_v0 = vmul.f32 -1.442695, %v4809_v63  ;;  %v3274_v20 = vpop.f32.mrb[48].mxu1  ;;  %v2546_v28 = vmul.f32 %v3785_v14, %v4728_v34 }
 0x246   : > { %v3789_v39 = vpop.eup %3788  ;;  %v2544_v7 = vmul.f32 %v3787_v5, %v4732_v27  ;;  %3806 = vrcp.f32 %v2357_v59  ;;  %v3027_v54 = vmul.f32 -1.442695, %v4813_v48  ;;  %v2043_v30 = vmul.f32 %v3274_v20, %v4519_v44  ;;  %v1923_v47 = vpop.f32.mrb[49].mxu1  ;;  %v4854_v5 = vld [vmem:[%s4962_s6] ss:$0 sm:$0xff] }
 0x247   : > { %v3791_v2 = vpop.eup %3790  ;;  %v2607_v9 = vadd.f32 %v2606_v62, %v2543_v43  ;;  %3808 = vpow2.f32 %v3028_v51  ;;  %v2041_v16 = vmul.f32 %v4519_v44, %v1923_v47  ;;  %v3275_v26 = vpop.f32.mrb[50].mxu1  ;;  %v2547_v34 = vmul.f32 %v3789_v39, %v4738_v10 }
 0x248   : > { %v3793_v29 = vpop.eup %3792  ;;  %v2545_v11 = vmul.f32 %v3791_v2, %v4742_v6  ;;  %3810 = vpow2.f32 %v3026_v3  ;;  %v4823_v21 = vadd.f32 %v4524_v22, %v2043_v30  ;;  %v2044_v27 = vmul.f32 %v3275_v26, %v4519_v44  ;;  %v1926_v13 = vpop.f32.mrb[51].mxu1 }
 0x249   : > { %v3795_v49 = vpop.eup %3794  ;;  %v2608_v46 = vadd.f32 %v2607_v9, %v2544_v7  ;;  %v2362_v12 = vadd.f32 1.0, %v3793_v29  ;;  %3812 = vpow2.f32 %v3029_v0  ;;  %v4827_v8 = vadd.f32 %v4524_v22, %v2041_v16 }
 0x24a   : > { %v3797_v38 = vpop.eup %3796  ;;  %v2360_v23 = vadd.f32 1.0, %v3795_v49  ;;  %3814 = vpow2.f32 %v3027_v54  ;;  %v4831_v6 = vadd.f32 %v4524_v22, %v2044_v27  ;;  %v3032_v53 = vmul.f32 -1.442695, %v4823_v21 }
 0x24b   : > { %v3799_v52 = vpop.eup %3798  ;;  %v2609_v55 = vadd.f32 %v2608_v46, %v2545_v11  ;;  %3816 = vrcp.f32 %v2362_v12  ;;  %v2363_v31 = vadd.f32 1.0, %v3797_v38  ;;  %v3030_v36 = vmul.f32 -1.442695, %v4827_v8 }
 0x24c   : > { %v3801_v24 = vpop.eup %3800  ;;  %3818 = vrcp.f32 %v2360_v23  ;;  %v2361_v32 = vadd.f32 1.0, %v3799_v52  ;;  %v2042_v57 = vmul.f32 %v4519_v44, %v1926_v13  ;;  %v3033_v19 = vmul.f32 -1.442695, %v4831_v6 }
 0x24d   : > { %v2610_v25 = vadd.f32 %v2609_v55, %v2546_v28  ;;  %3820 = vrcp.f32 %v2363_v31  ;;  %v3278_v1 = vpop.f32.mrb[52].mxu1 }
 0x24e   : > { %v3803_v41 = vpop.eup %3802  ;;  %3822 = vrcp.f32 %v2361_v32  ;;  %v4839_v50 = vadd.f32 %v4524_v22, %v2042_v57  ;;  %v2047_v45 = vmul.f32 %v4844_v18, %v3278_v1  ;;  %v1939_v44 = vpop.f32.mrb[53].mxu1  ;;  %v2550_v22 = vmul.f32 %v3801_v24, %v4753_v17 }
 0x24f   : > { %v3805_v58 = vpop.eup %3804  ;;  %v2548_v10 = vmul.f32 %v3803_v41, %v4756_v61  ;;  %v2611_v60 = vadd.f32 %v2610_v25, %v2547_v34  ;;  %3824 = vpow2.f32 %v3032_v53  ;;  %v2045_v51 = vmul.f32 %v4844_v18, %v1939_v44  ;;  %v3279_v14 = vpop.f32.mrb[54].mxu1 }
 0x250   : > { %v3807_v59 = vpop.eup %3806  ;;  %3826 = vpow2.f32 %v3030_v36  ;;  %v3031_v3 = vmul.f32 -1.442695, %v4839_v50  ;;  %v4857_v43 = vadd.f32 %v4854_v5, %v2047_v45  ;;  %v1942_v61 = vpop.f32.mrb[55].mxu1  ;;  %v2551_v7 = vmul.f32 %v3805_v58, %v4759_v56 }
 0x251   : > { %v3809_v62 = vpop.eup %3808  ;;  %v2612_v0 = vadd.f32 %v2611_v60, %v2548_v10  ;;  %v2549_v20 = vmul.f32 %v3807_v59, %v4768_v15  ;;  %3828 = vpow2.f32 %v3033_v19  ;;  %v4861_v39 = vadd.f32 %v4854_v5, %v2045_v51 }
 0x252   : > { %v3811_v17 = vpop.eup %3810  ;;  %v2366_v54 = vadd.f32 1.0, %v3809_v62  ;;  %3830 = vpow2.f32 %v3031_v3  ;;  %v2048_v30 = vmul.f32 %v4844_v18, %v3279_v14  ;;  %v3036_v16 = vmul.f32 -1.442695, %v4857_v43 }
 0x253   : > { %v3813_v47 = vpop.eup %3812  ;;  %v2613_v2 = vadd.f32 %v2612_v0, %v2549_v20  ;;  %v2364_v9 = vadd.f32 1.0, %v3811_v17  ;;  %v2046_v26 = vmul.f32 %v4844_v18, %v1942_v61  ;;  %v3034_v11 = vmul.f32 -1.442695, %v4861_v39 }
 0x254   : > { %v3815_v29 = vpop.eup %3814  ;;  %3832 = vrcp.f32 %v2366_v54  ;;  %v2367_v15 = vadd.f32 1.0, %v3813_v47  ;;  %v4869_v27 = vadd.f32 %v4854_v5, %v2048_v30 }
 0x255   : > { %v3817_v56 = vpop.eup %3816  ;;  %v2614_v13 = vadd.f32 %v2613_v2, %v2550_v22  ;;  %3834 = vrcp.f32 %v2364_v9  ;;  %v2365_v49 = vadd.f32 1.0, %v3815_v29  ;;  %v4872_v46 = vadd.f32 %v4854_v5, %v2046_v26 }
 0x256   : > { %v3819_v12 = vpop.eup %3818  ;;  %3836 = vrcp.f32 %v2367_v15  ;;  %v3037_v38 = vmul.f32 -1.442695, %v4869_v27  ;;  %v3282_v28 = vpop.f32.mrb[56].mxu1  ;;  %v2554_v32 = vmul.f32 %v3817_v56, %v4777_v33 }
 0x257   : > { %v3821_v23 = vpop.eup %3820  ;;  %v2552_v52 = vmul.f32 %v3819_v12, %v4780_v42  ;;  %v2615_v55 = vadd.f32 %v2614_v13, %v2551_v7  ;;  %3838 = vrcp.f32 %v2365_v49  ;;  %v3035_v31 = vmul.f32 -1.442695, %v4872_v46  ;;  %v1955_v53 = vpop.f32.mrb[57].mxu1 }
 0x258   : > { %v3823_v24 = vpop.eup %3822  ;;  %3840 = vpow2.f32 %v3036_v16  ;;  %v2051_v36 = vmul.f32 %v4844_v18, %v3282_v28  ;;  %v2049_v57 = vmul.f32 %v4844_v18, %v1955_v53  ;;  %v3283_v34 = vpop.f32.mrb[58].mxu1  ;;  %v2555_v59 = vmul.f32 %v3821_v23, %v4786_v37 }
 0x259   : > { %v3825_v25 = vpop.eup %3824  ;;  %v2616_v19 = vadd.f32 %v2615_v55, %v2552_v52  ;;  %v2553_v1 = vmul.f32 %v3823_v24, %v4791_v4  ;;  %3842 = vpow2.f32 %v3034_v11  ;;  %v2052_v42 = vmul.f32 %v4844_v18, %v3283_v34  ;;  %v1958_v41 = vpop.f32.mrb[59].mxu1 }
 0x25a   : > { %v3827_v45 = vpop.eup %3826  ;;  %v2370_v44 = vadd.f32 1.0, %v3825_v25  ;;  %3844 = vpow2.f32 %v3037_v38  ;;  %v4883_v58 = vadd.f32 %v4854_v5, %v2051_v36  ;;  %v4886_v33 = vadd.f32 %v4854_v5, %v2049_v57 }
 0x25b   : > { %v3829_v10 = vpop.eup %3828  ;;  %v2617_v60 = vadd.f32 %v2616_v19, %v2553_v1  ;;  %v2368_v51 = vadd.f32 1.0, %v3827_v45  ;;  %3846 = vpow2.f32 %v3035_v31  ;;  %v4889_v14 = vadd.f32 %v4854_v5, %v2052_v42 }
 0x25c   : > { %v3831_v4 = vpop.eup %3830  ;;  %3848 = vrcp.f32 %v2370_v44  ;;  %v2371_v22 = vadd.f32 1.0, %v3829_v10  ;;  %v3040_v3 = vmul.f32 -1.442695, %v4883_v58  ;;  %v3038_v0 = vmul.f32 -1.442695, %v4886_v33 }
 0x25d   : > { %v2618_v61 = vadd.f32 %v2617_v60, %v2554_v32  ;;  %3850 = vrcp.f32 %v2368_v51  ;;  %v2369_v62 = vadd.f32 1.0, %v3831_v4  ;;  %v3041_v17 = vmul.f32 -1.442695, %v4889_v14 }
 0x25e   : > { %v3833_v20 = vpop.eup %3832  ;;  %3852 = vrcp.f32 %v2371_v22  ;;  %v2050_v7 = vmul.f32 %v4844_v18, %v1958_v41  ;;  %v3286_v54 = vpop.f32.mrb[60].mxu1 }
 0x25f   : > { %v3835_v30 = vpop.eup %3834  ;;  %v2619_v47 = vadd.f32 %v2618_v61, %v2555_v59  ;;  %3854 = vrcp.f32 %v2369_v62  ;;  %v2055_v37 = vmul.f32 %v4844_v18, %v3286_v54  ;;  %v1971_v2 = vpop.f32.mrb[61].mxu1  ;;  %v2558_v56 = vmul.f32 %v3833_v20, %v4798_v35 }
 0x260   : > { %v3837_v9 = vpop.eup %3836  ;;  %v2556_v16 = vmul.f32 %v3835_v30, %v4802_v40  ;;  %3856 = vpow2.f32 %v3040_v3  ;;  %v4899_v26 = vadd.f32 %v4854_v5, %v2050_v7  ;;  %v2053_v29 = vmul.f32 %v4844_v18, %v1971_v2  ;;  %v3287_v15 = vpop.f32.mrb[62].mxu1 }
 0x261   : > { %v3839_v11 = vpop.eup %3838  ;;  %3858 = vpow2.f32 %v3038_v0  ;;  %v4904_v13 = vadd.f32 %v4854_v5, %v2055_v37  ;;  %v2056_v49 = vmul.f32 %v4844_v18, %v3287_v15  ;;  %v1974_v12 = vpop.f32.mrb[63].mxu1  ;;  %v2559_v55 = vmul.f32 %v3837_v9, %v4809_v63 }
 0x262   : > { %v3841_v38 = vpop.eup %3840  ;;  %v2620_v28 = vadd.f32 %v2619_v47, %v2556_v16  ;;  %v2557_v40 = vmul.f32 %v3839_v11, %v4813_v48  ;;  %3860 = vpow2.f32 %v3041_v17  ;;  %v3039_v23 = vmul.f32 -1.442695, %v4899_v26 }
 0x263   : > { %v3843_v52 = vpop.eup %3842  ;;  %v2374_v31 = vadd.f32 1.0, %v3841_v38  ;;  %v4911_v35 = vadd.f32 %v4854_v5, %v2053_v29  ;;  %v4914_v53 = vadd.f32 %v4854_v5, %v2056_v49  ;;  %v2054_v57 = vmul.f32 %v4844_v18, %v1974_v12 }
 0x264   : > { %v3845_v24 = vpop.eup %3844  ;;  %v2621_v32 = vadd.f32 %v2620_v28, %v2557_v40  ;;  %v2372_v36 = vadd.f32 1.0, %v3843_v52  ;;  %3862 = vpow2.f32 %v3039_v23  ;;  %v3044_v25 = vmul.f32 -1.442695, %v4904_v13 }
 0x265   : > { %v3847_v48 = vpop.eup %3846  ;;  %3864 = vrcp.f32 %v2374_v31  ;;  %v2375_v34 = vadd.f32 1.0, %v3845_v24  ;;  %v3042_v63 = vmul.f32 -1.442695, %v4911_v35  ;;  %v4920_v41 = vadd.f32 %v4854_v5, %v2054_v57 }
 0x266   : > { %v3849_v19 = vpop.eup %3848  ;;  %v2622_v1 = vadd.f32 %v2621_v32, %v2558_v56  ;;  %3866 = vrcp.f32 %v2372_v36  ;;  %v2373_v42 = vadd.f32 1.0, %v3847_v48  ;;  %v3045_v44 = vmul.f32 -1.442695, %v4914_v53 }
 0x267   : > { %v3851_v45 = vpop.eup %3850  ;;  %3868 = vrcp.f32 %v2375_v34  ;;  %v3043_v51 = vmul.f32 -1.442695, %v4920_v41  ;;  %v2562_v61 = vmul.f32 %v3849_v19, %v4823_v21 }
 0x268   : > { %v3853_v10 = vpop.eup %3852  ;;  %v2560_v18 = vmul.f32 %v3851_v45, %v4827_v8  ;;  %v2623_v60 = vadd.f32 %v2622_v1, %v2559_v55  ;;  %3870 = vrcp.f32 %v2373_v42 }
 0x269   : > { %v3855_v4 = vpop.eup %3854  ;;  %3872 = vpow2.f32 %v3044_v25  ;;  %v2563_v7 = vmul.f32 %v3853_v10, %v4831_v6 }
 0x26a   : > { %v3857_v59 = vpop.eup %3856  ;;  %v2624_v22 = vadd.f32 %v2623_v60, %v2560_v18  ;;  %v2561_v3 = vmul.f32 %v3855_v4, %v4839_v50  ;;  %3874 = vpow2.f32 %v3042_v63 }
 0x26b   : > { %v3859_v5 = vpop.eup %3858  ;;  %3876 = vpow2.f32 %v3045_v44  ;;  %v2378_v20 = vadd.f32 1.0, %v3857_v59 }
 0x26c   : > { %v3861_v62 = vpop.eup %3860  ;;  %v2625_v0 = vadd.f32 %v2624_v22, %v2561_v3  ;;  %v2376_v17 = vadd.f32 1.0, %v3859_v5  ;;  %3878 = vpow2.f32 %v3043_v51 }
 0x26d   : > { %v2379_v47 = vadd.f32 1.0, %v3861_v62 }
 0x26e   : > { %v3863_v8 = vpop.eup %3862  ;;  %v2626_v54 = vadd.f32 %v2625_v0, %v2562_v61  ;;  %3880 = vrcp.f32 %v2376_v17 }
 0x26f   : > { %v3865_v30 = vpop.eup %3864  ;;  %v2377_v37 = vadd.f32 1.0, %v3863_v8  ;;  %3882 = vrcp.f32 %v2378_v20 }
 0x270   : > { %v3867_v2 = vpop.eup %3866  ;;  %v2627_v50 = vadd.f32 %v2626_v54, %v2563_v7  ;;  %v2566_v12 = vmul.f32 %v3865_v30, %v4857_v43 }
 0x271   : > { %v3869_v9 = vpop.eup %3868  ;;  %v2564_v21 = vmul.f32 %v3867_v2, %v4861_v39  ;;  %3884 = vrcp.f32 %v2377_v37 }
 0x272   : > { %v3871_v16 = vpop.eup %3870  ;;  %3886 = vrcp.f32 %v2379_v47  ;;  %v2567_v23 = vmul.f32 %v3869_v9, %v4869_v27 }
 0x273   : > { %v3873_v29 = vpop.eup %3872  ;;  %v2628_v15 = vadd.f32 %v2627_v50, %v2564_v21  ;;  %v2565_v11 = vmul.f32 %v3871_v16, %v4872_v46 }
 0x274   : > { %v3875_v56 = vpop.eup %3874  ;;  %v2382_v6 = vadd.f32 1.0, %v3873_v29 }
 0x275   : > { %v3877_v49 = vpop.eup %3876  ;;  %v2629_v38 = vadd.f32 %v2628_v15, %v2565_v11  ;;  %v2380_v28 = vadd.f32 1.0, %v3875_v56 }
 0x276   : > { %v3879_v40 = vpop.eup %3878  ;;  %v2383_v39 = vadd.f32 1.0, %v3877_v49 }
 0x277   : > { %v2630_v52 = vadd.f32 %v2629_v38, %v2566_v12  ;;  %3888 = vrcp.f32 %v2380_v28  ;;  %v2381_v55 = vadd.f32 1.0, %v3879_v40 }
 0x278   : > { %v3881_v31 = vpop.eup %3880  ;;  %3890 = vrcp.f32 %v2382_v6 }
 0x279   : > { %v2568_v24 = vmul.f32 %v3881_v31, %v4886_v33  ;;  %v2631_v46 = vadd.f32 %v2630_v52, %v2567_v23  ;;  %3892 = vrcp.f32 %v2381_v55  ;;  %v3883_v32 = vpop.eup %3882 }
 0x27a   : > { %3894 = vrcp.f32 %v2383_v39  ;;  %v2570_v34 = vmul.f32 %v3883_v32, %v4883_v58 }
 0x27b   : > { %v3885_v36 = vpop.eup %3884  ;;  %v2632_v57 = vadd.f32 %v2631_v46, %v2568_v24 }
 0x27c   : > { %v2569_v43 = vmul.f32 %v3885_v36, %v4899_v26  ;;  %v3887_v48 = vpop.eup %3886 }
 0x27d   : > { %v2571_v25 = vmul.f32 %v3887_v48, %v4889_v14 }
 0x27e   : > { %v2633_v27 = vadd.f32 %v2632_v57, %v2569_v43 }
 0x280   : > { %v2634_v63 = vadd.f32 %v2633_v27, %v2570_v34 }
 0x281   : > { %v3889_v19 = vpop.eup %3888 }
 0x282   : > { %v3891_v1 = vpop.eup %3890  ;;  %v2572_v42 = vmul.f32 %v3889_v19, %v4911_v35  ;;  %v2635_v33 = vadd.f32 %v2634_v63, %v2571_v25 }
 0x283   : > { %v3893_v45 = vpop.eup %3892  ;;  %v2574_v26 = vmul.f32 %v3891_v1, %v4904_v13 }
 0x284   : > { %v2636_v44 = vadd.f32 %v2635_v33, %v2572_v42  ;;  %v2573_v10 = vmul.f32 %v3893_v45, %v4920_v41  ;;  %v3895_v18 = vpop.eup %3894  ;;  %v2669_v41 = vld [vmem:[%s4964_s8] sm:$0x1] }
 0x285   : > { %v2575_v58 = vmul.f32 %v3895_v18, %v4914_v53 }
 0x286   : > { %v2637_v60 = vadd.f32 %v2636_v44, %v2573_v10 }
 0x288   : > { %v2638_v51 = vadd.f32 %v2637_v60, %v2574_v26 }
 0x28a   : > { %v2639_v4 = vadd.f32 %v2638_v51, %v2575_v58 }
 0x28c   : > { %v2646_v14 = vrot.slane %v2639_v4, 4 }
 0x28e   : > { %v2647_v59 = vadd.f32 %v2646_v14, %v2639_v4 }
 0x290   : > { %v2648_v22 = vrot.slane %v2647_v59, 2 }
 0x292   : > { %v2649_v3 = vadd.f32 %v2648_v22, %v2647_v59 }
 0x294   : > { %v2650_v5 = vrot.slane %v2649_v3, 1 }
 0x296   : > { %v2651_v35 = vadd.f32 %v2650_v5, %v2649_v3 }
 0x298   : > { %v2652_v61 = vpack.c.bf16 %v2651_v35, %v2651_v35 }
 0x29a   : > { %3305 = vmatmul.mubr.bf16.vlgmr.msra.gmra.mrb[64].mxu0 %v2652_v61 }
 0x36d   : > { %v2752_v13 = vpop.f32.mrb[64].mxu0 }
 0x36e   : > { %v2753_v53 = vadd.f32 %v2752_v13, %v2669_v41  ;;  %v3306_v62 = vpop.f32.mrb[65].mxu0 }
 0x36f   : > { %v2755_v0 = vpop.f32.mrb[66].mxu0 }
 0x370   : > { %2758 = vst [vmem:[%s378_s23] sm:$0x1] %v2753_v53  ;;  %v3307_v20 = vpop.f32.mrb[67].mxu0 }
 0x371 PF: > { %s19_s11 = sadd.s32 1, %s3922_s11   ;;  %s4966_s30 = smov %s3918_s10 }
 0x372   : > { %p16_p5 = scmp.ge.s32.totalorder %s19_s11, 4   ;;  %s4967_s10 = smov %s4969_s12 }
 0x374   :  { %18 = sbr.rel (!%p16_p5) target bundleno = 2 (0x2), region = 94 }

</bundles_post_ra>
